<compile_context>
chip_gen: v7x
topology: tpu7x:2x2x1
jax: 0.10.0
libtpu: 0.0.40
codegen_flags: <defaults>
</compile_context>

<pallas_src>
import math
import functools

import jax
import jax.numpy as jnp
from jax import lax
from jax.experimental import pallas as pl
from jax.experimental.pallas import tpu as pltpu


def _mha_kernel(q_ref, k_ref, v_ref,
                wq_ref, wk_ref, wv_ref,
                wfc_ref, bfc_ref, gamma_ref, beta_ref,
                y_ref, *attn_refs,
                n_head, d_k, d_v, ln_eps):
    """One (batch, q-tile) grid step.

    Weights arrive pre-transposed (in_features, out_features) and w_q already
    carries the 1/sqrt(d_k) scale, so the MXU consumes them directly.
    """
    q = q_ref[0]          # (tq, D)  -- also the residual
    k = k_ref[0]          # (Lk, D)
    v = v_ref[0]          # (Lv, D)

    tq = q.shape[0]
    lk = k.shape[0]
    lv = v.shape[0]

    # Projections: x @ W  (weights already transposed; scale folded into w_q).
    qp = jnp.dot(q, wq_ref[...], preferred_element_type=jnp.float32)   # (tq, H*dk)
    kp = jnp.dot(k, wk_ref[...], preferred_element_type=jnp.float32)   # (Lk, H*dk)
    vp = jnp.dot(v, wv_ref[...], preferred_element_type=jnp.float32)   # (Lv, H*dv)

    # Head-leading layout for head-batched MXU matmuls (one relayout per step,
    # instead of per-head 8-lane slices + concat).
    qh = jnp.transpose(qp.reshape(tq, n_head, d_k), (1, 0, 2))          # (H, tq, dk)
    kh = jnp.transpose(kp.reshape(lk, n_head, d_k), (1, 0, 2))          # (H, Lk, dk)
    vh = jnp.transpose(vp.reshape(lv, n_head, d_v), (1, 0, 2))          # (H, Lv, dv)

    # Scores + softmax over keys, batched over heads.
    scores = jnp.einsum('hqd,hkd->hqk', qh, kh,
                        preferred_element_type=jnp.float32)             # (H, tq, Lk)
    m = jnp.max(scores, axis=-1, keepdims=True)
    e = jnp.exp(scores - m)
    denom = jnp.sum(e, axis=-1, keepdims=True)
    attn = e * pl.reciprocal(denom, approx=False)                       # (H, tq, Lk)

    if attn_refs:                       # optional output: single block store
        attn_refs[0][0] = attn.astype(attn_refs[0].dtype)

    # attn @ V, batched over heads, then concat heads -> (tq, H*dv).
    ctx_h = jnp.einsum('hqk,hkd->hqd', attn, vh,
                       preferred_element_type=jnp.float32)              # (H, tq, dv)
    ctx = jnp.transpose(ctx_h, (1, 0, 2)).reshape(tq, n_head * d_v)

    # Output projection (fc) with bias.
    y = jnp.dot(ctx, wfc_ref[...], preferred_element_type=jnp.float32) + bfc_ref[0]

    # LayerNorm over d_model (biased variance, eps=1e-6), then residual add.
    mu = jnp.mean(y, axis=-1, keepdims=True)
    var = jnp.mean((y - mu) ** 2, axis=-1, keepdims=True)
    y = (y - mu) * lax.rsqrt(var + ln_eps)
    y = y * gamma_ref[0] + beta_ref[0]

    y_ref[0] = (y + q).astype(y_ref.dtype)


def multi_head_attention(q, k, v, params, *, n_head, d_k, d_v,
                         block_q=None, return_attn=True):
    """q, k, v: (B, L, d_model) float32.  Returns (output, attn_or_None)."""
    B, Lq, D = q.shape
    Lk = k.shape[1]
    Lv = v.shape[1]
    assert Lk == Lv, "attn @ V requires len_k == len_v"
    HK = n_head * d_k
    HV = n_head * d_v
    temperature = float(d_k) ** 0.5

    wq, wk, wv, wfc, bfc, gamma, beta = params

    # Host-side (one-time) weight prep: transpose to (in, out) so the kernel
    # never relayouts them; fold the 1/sqrt(d_k) scale into w_q.
    wq_t = jnp.transpose(wq) / temperature        # (D, HK)
    wk_t = jnp.transpose(wk)                      # (D, HK)
    wv_t = jnp.transpose(wv)                      # (D, HV)
    wfc_t = jnp.transpose(wfc)                    # (HV, D)
    bfc_2d = bfc.reshape(1, D)
    gamma_2d = gamma.reshape(1, D)
    beta_2d = beta.reshape(1, D)

    # Query tiling: bounds per-step VMEM to O(H * block_q * Lk) so long
    # sequences fit the 64 MiB (v7x) / scoped-default VMEM budgets.
    if block_q is None:
        block_q = Lq if Lq <= 256 else 256
    assert Lq % block_q == 0, "Lq must be divisible by block_q"
    assert block_q == Lq or block_q % 8 == 0, "block_q must be a multiple of 8"
    nq = Lq // block_q

    kernel = functools.partial(_mha_kernel, n_head=n_head, d_k=d_k, d_v=d_v,
                               ln_eps=1e-6)

    in_specs = [
        pl.BlockSpec((1, block_q, D), lambda b, qi: (b, qi, 0)),   # q (+ residual)
        pl.BlockSpec((1, Lk, D), lambda b, qi: (b, 0, 0)),         # k
        pl.BlockSpec((1, Lv, D), lambda b, qi: (b, 0, 0)),         # v
        pl.BlockSpec((D, HK), lambda b, qi: (0, 0)),               # w_q^T / sqrt(dk)
        pl.BlockSpec((D, HK), lambda b, qi: (0, 0)),               # w_k^T
        pl.BlockSpec((D, HV), lambda b, qi: (0, 0)),               # w_v^T
        pl.BlockSpec((HV, D), lambda b, qi: (0, 0)),               # fc^T
        pl.BlockSpec((1, D), lambda b, qi: (0, 0)),                # fc bias
        pl.BlockSpec((1, D), lambda b, qi: (0, 0)),                # ln gamma
        pl.BlockSpec((1, D), lambda b, qi: (0, 0)),                # ln beta
    ]

    out_shapes = [jax.ShapeDtypeStruct((B, Lq, D), jnp.float32)]
    out_specs = [pl.BlockSpec((1, block_q, D), lambda b, qi: (b, qi, 0))]
    if return_attn:
        out_shapes.append(jax.ShapeDtypeStruct((B, n_head, Lq, Lk), jnp.float32))
        out_specs.append(pl.BlockSpec((1, n_head, block_q, Lk),
                                      lambda b, qi: (b, 0, qi, 0)))

    grid_spec = pltpu.PrefetchScalarGridSpec(
        num_scalar_prefetch=0,
        grid=(B, nq),
        in_specs=in_specs,
        out_specs=tuple(out_specs),
    )

    outs = pl.pallas_call(
        kernel,
        out_shape=tuple(out_shapes),
        grid_spec=grid_spec,
        compiler_params=pltpu.CompilerParams(
            dimension_semantics=("parallel", "parallel")),
    )(q, k, v, wq_t, wk_t, wv_t, wfc_t, bfc_2d, gamma_2d, beta_2d)

    if return_attn:
        return outs[0], outs[1]
    return outs[0], None


def _reference(q, k, v, params, *, n_head, d_k, d_v):
    """Plain-JAX reference matching the PyTorch forward (dropout = identity)."""
    wq, wk, wv, wfc, bfc, gamma, beta = params
    B, Lq, D = q.shape
    Lk = k.shape[1]
    temperature = float(d_k) ** 0.5

    qp = (q @ wq.T).reshape(B, Lq, n_head, d_k).transpose(0, 2, 1, 3)
    kp = (k @ wk.T).reshape(B, Lk, n_head, d_k).transpose(0, 2, 1, 3)
    vp = (v @ wv.T).reshape(B, Lk, n_head, d_v).transpose(0, 2, 1, 3)

    scores = jnp.einsum('bhqd,bhkd->bhqk', qp / temperature, kp)
    attn = jax.nn.softmax(scores, axis=-1)
    ctx = jnp.einsum('bhqk,bhkd->bhqd', attn, vp)
    ctx = ctx.transpose(0, 2, 1, 3).reshape(B, Lq, n_head * d_v)

    y = ctx @ wfc.T + bfc
    mu = jnp.mean(y, axis=-1, keepdims=True)
    var = jnp.mean((y - mu) ** 2, axis=-1, keepdims=True)
    y = (y - mu) / jnp.sqrt(var + 1e-6) * gamma + beta
    return y + q, attn


def init_params(key, *, n_head, d_model, n_layers, d_k, d_v):
    """Deterministic init mirroring the PyTorch module's __init__."""
    kq, kk, kv, kfcw, kfcb = jax.random.split(key, 5)

    def kaiming_uniform(k, out_f, in_f):
        # kaiming_uniform_(mode='fan_in', nonlinearity='relu'):
        # gain = sqrt(2), bound = sqrt(3) * gain / sqrt(fan_in)
        bound = math.sqrt(3.0) * math.sqrt(2.0) / math.sqrt(in_f)
        return jax.random.uniform(k, (out_f, in_f), jnp.float32, -bound, bound)

    wq = kaiming_uniform(kq, d_k * n_head, d_model)
    wk = kaiming_uniform(kk, d_k * n_head, d_model)
    wv = kaiming_uniform(kv, d_v * n_head, d_model)

    std = 0.02 / math.sqrt(2 * n_layers)
    wfc = std * jax.random.normal(kfcw, (d_model, d_v * n_head), jnp.float32)
    b_bound = 1.0 / math.sqrt(d_v * n_head)
    bfc = jax.random.uniform(kfcb, (d_model,), jnp.float32, -b_bound, b_bound)

    gamma = jnp.ones((d_model,), jnp.float32)
    beta = jnp.zeros((d_model,), jnp.float32)
    return (wq, wk, wv, wfc, bfc, gamma, beta)


if __name__ == "__main__":
    # Small, module-consistent shapes: batch=2, seq=8, d_model=32, 4 heads of dim 8.
    B, L, D = 2, 8, 32
    n_head, d_k, d_v, n_layers = 4, 8, 8, 2

    key = jax.random.PRNGKey(0)
    k_params, k_q, k_k, k_v = jax.random.split(key, 4)

    params = init_params(k_params, n_head=n_head, d_model=D, n_layers=n_layers,
                         d_k=d_k, d_v=d_v)

    q = jax.random.normal(k_q, (B, L, D), jnp.float32)
    k = jax.random.normal(k_k, (B, L, D), jnp.float32)
    v = jax.random.normal(k_v, (B, L, D), jnp.float32)

    out, attn = multi_head_attention(q, k, v, params,
                                     n_head=n_head, d_k=d_k, d_v=d_v)
    jax.block_until_ready(out)
    jax.block_until_ready(attn)

    ref_out, ref_attn = _reference(q, k, v, params,
                                   n_head=n_head, d_k=d_k, d_v=d_v)
    assert jnp.allclose(out, ref_out, atol=1e-4, rtol=1e-4), "output mismatch"
    assert jnp.allclose(attn, ref_attn, atol=1e-4, rtol=1e-4), "attn mismatch"

    # y-only path: skips the O(H*L^2) attention writeback entirely.
    out2, attn2 = multi_head_attention(q, k, v, params,
                                       n_head=n_head, d_k=d_k, d_v=d_v,
                                       return_attn=False)
    jax.block_until_ready(out2)
    assert attn2 is None
    assert jnp.allclose(out2, ref_out, atol=1e-4, rtol=1e-4), "output mismatch (no-attn path)"

    print("KERNEL_OK")
</pallas_src>

<mosaic_0001>
module attributes {stable_mosaic.version = 11 : i64} {
  func.func @_mha_kernel(%arg0: i32, %arg1: i32, %arg2: memref<1x8x32xf32, #tpu.memory_space<vmem>>, %arg3: memref<1x8x32xf32, #tpu.memory_space<vmem>>, %arg4: memref<1x8x32xf32, #tpu.memory_space<vmem>>, %arg5: memref<32x32xf32, #tpu.memory_space<vmem>>, %arg6: memref<32x32xf32, #tpu.memory_space<vmem>>, %arg7: memref<32x32xf32, #tpu.memory_space<vmem>>, %arg8: memref<32x32xf32, #tpu.memory_space<vmem>>, %arg9: memref<1x32xf32, #tpu.memory_space<vmem>>, %arg10: memref<1x32xf32, #tpu.memory_space<vmem>>, %arg11: memref<1x32xf32, #tpu.memory_space<vmem>>, %arg12: memref<1x8x32xf32, #tpu.memory_space<vmem>>, %arg13: memref<1x4x8x8xf32, #tpu.memory_space<vmem>>) attributes {dimension_semantics = [#tpu.dimension_semantics<parallel>, #tpu.dimension_semantics<parallel>], iteration_bounds = array<i64: 2, 1>, scalar_prefetch = 0 : i64, scratch_operands = 0 : i64, tpu.core_type = #tpu.core_type<tc>, window_params = [{transform_indices = @transform_0, window_bounds = array<i64: 1, 8, 32>}, {transform_indices = @transform_1, window_bounds = array<i64: 1, 8, 32>}, {transform_indices = @transform_2, window_bounds = array<i64: 1, 8, 32>}, {pipeline_mode = #tpu.pipeline_mode<synchronous>, transform_indices = @transform_3, window_bounds = array<i64: 32, 32>}, {pipeline_mode = #tpu.pipeline_mode<synchronous>, transform_indices = @transform_4, window_bounds = array<i64: 32, 32>}, {pipeline_mode = #tpu.pipeline_mode<synchronous>, transform_indices = @transform_5, window_bounds = array<i64: 32, 32>}, {pipeline_mode = #tpu.pipeline_mode<synchronous>, transform_indices = @transform_6, window_bounds = array<i64: 32, 32>}, {pipeline_mode = #tpu.pipeline_mode<synchronous>, transform_indices = @transform_7, window_bounds = array<i64: 1, 32>}, {pipeline_mode = #tpu.pipeline_mode<synchronous>, transform_indices = @transform_8, window_bounds = array<i64: 1, 32>}, {pipeline_mode = #tpu.pipeline_mode<synchronous>, transform_indices = @transform_9, window_bounds = array<i64: 1, 32>}, {transform_indices = @transform_10, window_bounds = array<i64: 1, 8, 32>}, {transform_indices = @transform_11, window_bounds = array<i64: 1, 4, 8, 8>}]} {
    %c0 = arith.constant 0 : index
    %c0_0 = arith.constant 0 : index
    %c0_1 = arith.constant 0 : index
    %0 = vector.load %arg2[%c0, %c0_0, %c0_1] : memref<1x8x32xf32, #tpu.memory_space<vmem>>, vector<1x8x32xf32>
    %1 = vector.shape_cast %0 : vector<1x8x32xf32> to vector<8x32xf32>
    %c0_2 = arith.constant 0 : index
    %c0_3 = arith.constant 0 : index
    %c0_4 = arith.constant 0 : index
    %2 = vector.load %arg3[%c0_2, %c0_3, %c0_4] : memref<1x8x32xf32, #tpu.memory_space<vmem>>, vector<1x8x32xf32>
    %3 = vector.shape_cast %2 : vector<1x8x32xf32> to vector<8x32xf32>
    %c0_5 = arith.constant 0 : index
    %c0_6 = arith.constant 0 : index
    %c0_7 = arith.constant 0 : index
    %4 = vector.load %arg4[%c0_5, %c0_6, %c0_7] : memref<1x8x32xf32, #tpu.memory_space<vmem>>, vector<1x8x32xf32>
    %5 = vector.shape_cast %4 : vector<1x8x32xf32> to vector<8x32xf32>
    %c0_8 = arith.constant 0 : index
    %c0_9 = arith.constant 0 : index
    %6 = vector.load %arg5[%c0_8, %c0_9] : memref<32x32xf32, #tpu.memory_space<vmem>>, vector<32x32xf32>
    %cst = arith.constant dense<0.000000e+00> : vector<8x32xf32>
    %7 = tpu.matmul %1, %6, %cst {dimension_numbers = #tpu.dot_dimension_numbers<[1], [0], [0], [1], [0, 0, 1, 1], [], []>} : vector<8x32xf32>, vector<32x32xf32>, vector<8x32xf32> -> vector<8x32xf32>
    %c0_10 = arith.constant 0 : index
    %c0_11 = arith.constant 0 : index
    %8 = vector.load %arg6[%c0_10, %c0_11] : memref<32x32xf32, #tpu.memory_space<vmem>>, vector<32x32xf32>
    %cst_12 = arith.constant dense<0.000000e+00> : vector<8x32xf32>
    %9 = tpu.matmul %3, %8, %cst_12 {dimension_numbers = #tpu.dot_dimension_numbers<[1], [0], [0], [1], [0, 0, 1, 1], [], []>} : vector<8x32xf32>, vector<32x32xf32>, vector<8x32xf32> -> vector<8x32xf32>
    %c0_13 = arith.constant 0 : index
    %c0_14 = arith.constant 0 : index
    %10 = vector.load %arg7[%c0_13, %c0_14] : memref<32x32xf32, #tpu.memory_space<vmem>>, vector<32x32xf32>
    %cst_15 = arith.constant dense<0.000000e+00> : vector<8x32xf32>
    %11 = tpu.matmul %5, %10, %cst_15 {dimension_numbers = #tpu.dot_dimension_numbers<[1], [0], [0], [1], [0, 0, 1, 1], [], []>} : vector<8x32xf32>, vector<32x32xf32>, vector<8x32xf32> -> vector<8x32xf32>
    %12 = vector.shape_cast %7 : vector<8x32xf32> to vector<8x4x8xf32>
    %13 = tpu.transpose %12, [1, 0, 2] : vector<8x4x8xf32> -> vector<4x8x8xf32>
    %14 = vector.shape_cast %9 : vector<8x32xf32> to vector<8x4x8xf32>
    %15 = tpu.transpose %14, [1, 0, 2] : vector<8x4x8xf32> -> vector<4x8x8xf32>
    %16 = vector.shape_cast %11 : vector<8x32xf32> to vector<8x4x8xf32>
    %17 = tpu.transpose %16, [1, 0, 2] : vector<8x4x8xf32> -> vector<4x8x8xf32>
    "tpu.trace_start"() <{level = 10 : i32, message = "hqd,hkd->hqk"}> : () -> ()
    %cst_16 = arith.constant dense<0.000000e+00> : vector<4x8x8xf32>
    %18 = tpu.matmul %13, %15, %cst_16 {dimension_numbers = #tpu.dot_dimension_numbers<[2], [2], [1], [1], [0, 0, 0, 1, 1, 1], [0], [0]>} : vector<4x8x8xf32>, vector<4x8x8xf32>, vector<4x8x8xf32> -> vector<4x8x8xf32>
    "tpu.trace_stop"() : () -> ()
    %cst_17 = arith.constant dense<0xFF800000> : vector<4x8xf32>
    %19 = vector.multi_reduction <maximumf>, %18, %cst_17 [2] : vector<4x8x8xf32> to vector<4x8xf32>
    %20 = vector.shape_cast %19 : vector<4x8xf32> to vector<4x8x1xf32>
    %21 = vector.broadcast %20 : vector<4x8x1xf32> to vector<4x8x8xf32>
    %22 = arith.subf %18, %21 : vector<4x8x8xf32>
    %23 = math.exp %22 : vector<4x8x8xf32>
    %cst_18 = arith.constant dense<0.000000e+00> : vector<4x8xf32>
    %24 = vector.multi_reduction <add>, %23, %cst_18 [2] : vector<4x8x8xf32> to vector<4x8xf32>
    %25 = vector.shape_cast %24 : vector<4x8xf32> to vector<4x8x1xf32>
    %26 = tpu.reciprocal %25 : vector<4x8x1xf32> -> vector<4x8x1xf32>
    %27 = vector.broadcast %26 : vector<4x8x1xf32> to vector<4x8x8xf32>
    %28 = arith.mulf %23, %27 : vector<4x8x8xf32>
    %c0_19 = arith.constant 0 : index
    %c0_20 = arith.constant 0 : index
    %c0_21 = arith.constant 0 : index
    %c0_22 = arith.constant 0 : index
    %29 = vector.load %arg13[%c0_19, %c0_20, %c0_21, %c0_22] : memref<1x4x8x8xf32, #tpu.memory_space<vmem>>, vector<1x4x8x8xf32>
    %30 = vector.shape_cast %29 : vector<1x4x8x8xf32> to vector<4x8x8xf32>
    %31 = vector.shape_cast %28 : vector<4x8x8xf32> to vector<1x4x8x8xf32>
    tpu.vector_store %arg13[%c0_19, %c0_20, %c0_21, %c0_22], %31 {strides = array<i32>} : memref<1x4x8x8xf32, #tpu.memory_space<vmem>>, vector<1x4x8x8xf32>,
    "tpu.trace_start"() <{level = 10 : i32, message = "hqk,hkd->hqd"}> : () -> ()
    %cst_23 = arith.constant dense<0.000000e+00> : vector<4x8x8xf32>
    %32 = tpu.matmul %28, %17, %cst_23 {dimension_numbers = #tpu.dot_dimension_numbers<[2], [1], [1], [2], [0, 0, 0, 1, 1, 2], [0], [0]>} : vector<4x8x8xf32>, vector<4x8x8xf32>, vector<4x8x8xf32> -> vector<4x8x8xf32>
    "tpu.trace_stop"() : () -> ()
    %33 = tpu.transpose %32, [1, 0, 2] : vector<4x8x8xf32> -> vector<8x4x8xf32>
    %34 = vector.shape_cast %33 : vector<8x4x8xf32> to vector<8x32xf32>
    %c0_24 = arith.constant 0 : index
    %c0_25 = arith.constant 0 : index
    %35 = vector.load %arg8[%c0_24, %c0_25] : memref<32x32xf32, #tpu.memory_space<vmem>>, vector<32x32xf32>
    %cst_26 = arith.constant dense<0.000000e+00> : vector<8x32xf32>
    %36 = tpu.matmul %34, %35, %cst_26 {dimension_numbers = #tpu.dot_dimension_numbers<[1], [0], [0], [1], [0, 0, 1, 1], [], []>} : vector<8x32xf32>, vector<32x32xf32>, vector<8x32xf32> -> vector<8x32xf32>
    %c0_27 = arith.constant 0 : index
    %c0_28 = arith.constant 0 : index
    %37 = vector.load %arg9[%c0_27, %c0_28] : memref<1x32xf32, #tpu.memory_space<vmem>>, vector<1x32xf32>
    %38 = vector.shape_cast %37 : vector<1x32xf32> to vector<32xf32>
    %39 = vector.shape_cast %38 : vector<32xf32> to vector<1x32xf32>
    %40 = vector.broadcast %39 : vector<1x32xf32> to vector<8x32xf32>
    %41 = arith.addf %36, %40 : vector<8x32xf32>
    %cst_29 = arith.constant dense<0.000000e+00> : vector<8xf32>
    %42 = vector.multi_reduction <add>, %41, %cst_29 [1] : vector<8x32xf32> to vector<8xf32>
    %43 = vector.shape_cast %42 : vector<8xf32> to vector<8x1xf32>
    %cst_30 = arith.constant 3.200000e+01 : f32
    %44 = vector.broadcast %cst_30 : f32 to vector<8x1xf32>
    %45 = arith.divf %43, %44 : vector<8x1xf32>
    %46 = vector.broadcast %45 : vector<8x1xf32> to vector<8x32xf32>
    %47 = arith.subf %41, %46 : vector<8x32xf32>
    %48 = arith.mulf %47, %47 : vector<8x32xf32>
    %cst_31 = arith.constant dense<0.000000e+00> : vector<8xf32>
    %49 = vector.multi_reduction <add>, %48, %cst_31 [1] : vector<8x32xf32> to vector<8xf32>
    %50 = vector.shape_cast %49 : vector<8xf32> to vector<8x1xf32>
    %cst_32 = arith.constant 3.200000e+01 : f32
    %51 = vector.broadcast %cst_32 : f32 to vector<8x1xf32>
    %52 = arith.divf %50, %51 : vector<8x1xf32>
    %53 = vector.broadcast %45 : vector<8x1xf32> to vector<8x32xf32>
    %54 = arith.subf %41, %53 : vector<8x32xf32>
    %cst_33 = arith.constant 9.99999997E-7 : f32
    %55 = vector.broadcast %cst_33 : f32 to vector<8x1xf32>
    %56 = arith.addf %52, %55 : vector<8x1xf32>
    %57 = math.rsqrt %56 : vector<8x1xf32>
    %58 = vector.broadcast %57 : vector<8x1xf32> to vector<8x32xf32>
    %59 = arith.mulf %54, %58 : vector<8x32xf32>
    %c0_34 = arith.constant 0 : index
    %c0_35 = arith.constant 0 : index
    %60 = vector.load %arg10[%c0_34, %c0_35] : memref<1x32xf32, #tpu.memory_space<vmem>>, vector<1x32xf32>
    %61 = vector.shape_cast %60 : vector<1x32xf32> to vector<32xf32>
    %62 = vector.shape_cast %61 : vector<32xf32> to vector<1x32xf32>
    %63 = vector.broadcast %62 : vector<1x32xf32> to vector<8x32xf32>
    %64 = arith.mulf %59, %63 : vector<8x32xf32>
    %c0_36 = arith.constant 0 : index
    %c0_37 = arith.constant 0 : index
    %65 = vector.load %arg11[%c0_36, %c0_37] : memref<1x32xf32, #tpu.memory_space<vmem>>, vector<1x32xf32>
    %66 = vector.shape_cast %65 : vector<1x32xf32> to vector<32xf32>
    %67 = vector.shape_cast %66 : vector<32xf32> to vector<1x32xf32>
    %68 = vector.broadcast %67 : vector<1x32xf32> to vector<8x32xf32>
    %69 = arith.addf %64, %68 : vector<8x32xf32>
    %70 = arith.addf %69, %1 : vector<8x32xf32>
    %c0_38 = arith.constant 0 : index
    %c0_39 = arith.constant 0 : index
    %c0_40 = arith.constant 0 : index
    %71 = vector.load %arg12[%c0_38, %c0_39, %c0_40] : memref<1x8x32xf32, #tpu.memory_space<vmem>>, vector<1x8x32xf32>
    %72 = vector.shape_cast %71 : vector<1x8x32xf32> to vector<8x32xf32>
    %73 = vector.shape_cast %70 : vector<8x32xf32> to vector<1x8x32xf32>
    tpu.vector_store %arg12[%c0_38, %c0_39, %c0_40], %73 {strides = array<i32>} : memref<1x8x32xf32, #tpu.memory_space<vmem>>, vector<1x8x32xf32>,
    return
  }
  func.func @transform_0(%arg0: i32, %arg1: i32) -> (i32, i32, i32) {
    %c0_i32 = arith.constant 0 : i32
    %c0_i32_0 = arith.constant 0 : i32
    return %arg0, %arg1, %c0_i32 : i32, i32, i32
  }
  func.func @transform_1(%arg0: i32, %arg1: i32) -> (i32, i32, i32) {
    %c0_i32 = arith.constant 0 : i32
    %c0_i32_0 = arith.constant 0 : i32
    %c0_i32_1 = arith.constant 0 : i32
    return %arg0, %c0_i32, %c0_i32_0 : i32, i32, i32
  }
  func.func @transform_2(%arg0: i32, %arg1: i32) -> (i32, i32, i32) {
    %c0_i32 = arith.constant 0 : i32
    %c0_i32_0 = arith.constant 0 : i32
    %c0_i32_1 = arith.constant 0 : i32
    return %arg0, %c0_i32, %c0_i32_0 : i32, i32, i32
  }
  func.func @transform_3(%arg0: i32, %arg1: i32) -> (i32, i32) {
    %c0_i32 = arith.constant 0 : i32
    %c0_i32_0 = arith.constant 0 : i32
    %c0_i32_1 = arith.constant 0 : i32
    return %c0_i32, %c0_i32_0 : i32, i32
  }
  func.func @transform_4(%arg0: i32, %arg1: i32) -> (i32, i32) {
    %c0_i32 = arith.constant 0 : i32
    %c0_i32_0 = arith.constant 0 : i32
    %c0_i32_1 = arith.constant 0 : i32
    return %c0_i32, %c0_i32_0 : i32, i32
  }
  func.func @transform_5(%arg0: i32, %arg1: i32) -> (i32, i32) {
    %c0_i32 = arith.constant 0 : i32
    %c0_i32_0 = arith.constant 0 : i32
    %c0_i32_1 = arith.constant 0 : i32
    return %c0_i32, %c0_i32_0 : i32, i32
  }
  func.func @transform_6(%arg0: i32, %arg1: i32) -> (i32, i32) {
    %c0_i32 = arith.constant 0 : i32
    %c0_i32_0 = arith.constant 0 : i32
    %c0_i32_1 = arith.constant 0 : i32
    return %c0_i32, %c0_i32_0 : i32, i32
  }
  func.func @transform_7(%arg0: i32, %arg1: i32) -> (i32, i32) {
    %c0_i32 = arith.constant 0 : i32
    %c0_i32_0 = arith.constant 0 : i32
    %c0_i32_1 = arith.constant 0 : i32
    return %c0_i32, %c0_i32_0 : i32, i32
  }
  func.func @transform_8(%arg0: i32, %arg1: i32) -> (i32, i32) {
    %c0_i32 = arith.constant 0 : i32
    %c0_i32_0 = arith.constant 0 : i32
    %c0_i32_1 = arith.constant 0 : i32
    return %c0_i32, %c0_i32_0 : i32, i32
  }
  func.func @transform_9(%arg0: i32, %arg1: i32) -> (i32, i32) {
    %c0_i32 = arith.constant 0 : i32
    %c0_i32_0 = arith.constant 0 : i32
    %c0_i32_1 = arith.constant 0 : i32
    return %c0_i32, %c0_i32_0 : i32, i32
  }
  func.func @transform_10(%arg0: i32, %arg1: i32) -> (i32, i32, i32) {
    %c0_i32 = arith.constant 0 : i32
    %c0_i32_0 = arith.constant 0 : i32
    return %arg0, %arg1, %c0_i32 : i32, i32, i32
  }
  func.func @transform_11(%arg0: i32, %arg1: i32) -> (i32, i32, i32, i32) {
    %c0_i32 = arith.constant 0 : i32
    %c0_i32_0 = arith.constant 0 : i32
    %c0_i32_1 = arith.constant 0 : i32
    return %arg0, %c0_i32, %arg1, %c0_i32_0 : i32, i32, i32, i32
  }
}

</mosaic_0001>

<bundles_post_ra>
// kernel: tpu_custom_call.1
= control target key start
LH: loop header
LB: loop body
LE: loop exit
PB: predicated region body
PF: predicated region fallthrough
CT: control target
= control target key end

     0   :  { %s3745_s0 = inlined_call_operand.hbm [shape: f32[2,8,32], index: 0, kind: input, shape index: {}]   ;;  %s3746_s1 = inlined_call_operand.hbm [shape: f32[2,8,32], index: 1, kind: input, shape index: {}]   ;;  %s3747_s2 = inlined_call_operand.hbm [shape: f32[2,8,32], index: 2, kind: input, shape index: {}]   ;;  %s3748_s3 = inlined_call_operand.hbm [shape: f32[32,32], index: 3, kind: input, shape index: {}]   ;;  %s3749_s4 = inlined_call_operand.hbm [shape: f32[32,32], index: 4, kind: input, shape index: {}]   ;;  %s3750_s5 = inlined_call_operand.hbm [shape: f32[32,32], index: 5, kind: input, shape index: {}]   ;;  %s3751_s6 = inlined_call_operand.hbm [shape: f32[32,32], index: 6, kind: input, shape index: {}]   ;;  %s3752_s7 = inlined_call_operand.vmem [shape: f32[1,32], index: 7, kind: input, shape index: {}]   ;;  %s3753_s8 = inlined_call_operand.vmem [shape: f32[1,32], index: 8, kind: input, shape index: {}]   ;;  %s3754_s9 = inlined_call_operand.vmem [shape: f32[1,32], index: 9, kind: input, shape index: {}]   ;;  %s3755_s10 = inlined_call_operand.hbm [shape: f32[2,8,32], index: 10, kind: output, shape index: {0}]   ;;  %s3756_s11 = inlined_call_operand.hbm [shape: f32[2,4,8,8], index: 11, kind: output, shape index: {1}]  }
   0x1   :  { %3784 = sst [smem:[#allocation30_spill]] %s3746_s1 }
   0x2   :  { %3785 = sst [smem:[#allocation31_spill]] %s3748_s3 }
   0x3   :  { %3786 = sst [smem:[#allocation32_spill]] %s3750_s5 }
   0x4   :  { %3787 = sst [smem:[#allocation33_spill]] %s3753_s8 }
   0x5   :  { %3788 = sst [smem:[#allocation34_spill]] %s3754_s9 }
   0x6   :  { %3789 = sst [smem:[#allocation35_spill]] %s3755_s10 }
   0x7   :  { %3790 = sst [smem:[#allocation36_spill]] %s3756_s11 }
   0x8   :  { %17 = vsyncpa [#allocation3], 0 }
   0x9   :  { %19 = vsyncpa [#allocation3 + $0x1], 0 }
   0xa   :  { %20 = vsyncpa [#allocation6], 0 }
   0xb   :  { %22 = vsyncpa [#allocation6 + $0x1], 0 }
   0xc   :  { %23 = vsyncpa [#allocation9], 0 }
   0xd   :  { %24 = vsyncpa [#allocation12], 0 }
   0xe   :  { %25 = vsyncpa [#allocation4], 0 }
   0xf   :  { %27 = vsyncpa [#allocation4 + $0x1], 0 }
  0x10   :  { %28 = vsyncpa [#allocation16], 0 }
  0x11   :  { %30 = vsyncpa [#allocation16 + $0x1], 0  ;;  %s3146_s17 = smov 0   ;;  %s3148_s18 = smov 0  }
  0x12   :  { %s3150_s19 = smov 0   ;;  %s3152_s20 = smov 0  }
  0x13   :  { %s3154_s21 = smov 0   ;;  %s3156_s22 = smov 0  }
  0x14 LB: > { %3791 = sst [smem:[#allocation23_spill]] %s3041_s17  ;;  %s3177_s23 = sadd.s32 4294967295, %s3061_s22   ;;  %s3061_s22 = sphi %s3156_s22, %s36_s22   ;;  %s3057_s21 = sphi %s3154_s21, %s3837_s21   ;;  %s3053_s20 = sphi %s3152_s20, %s3836_s20   ;;  %s3049_s19 = sphi %s3150_s19, %s3840_s19   ;;  %s3045_s18 = sphi %s3148_s18, %s3839_s18   ;;  %s3041_s17 = sphi %s3146_s17, %s3838_s17  }
  0x15   : > { %3792 = sst [smem:[#allocation24_spill]] %s3057_s21  ;;  %p2382_p0 = scmp.ge.s32.totalorder %s3061_s22, 1 }
  0x16   : > { %3793 = sst [smem:[#allocation25_spill]] %s3061_s22  ;;  %p3768_p1 = scmp.eq.s32.totalorder %s3177_s23, 0 }
  0x17   : > { %p336_p2 = scmp.lt.s32.totalorder %s3061_s22, 3  ;;  %s3063_s25 = smov [#allocation8]  }
  0x18   : > { %s348_s26 = sshll.u32 %s3063_s25, 4  ;;  %s3064_s28 = smov [#allocation11]   ;;  %s3186_s26 = int_to_ptr.vmem [resolvable:$true] %s348_s26 }
  0x19   : > { %p3182_p3 = pnand %p2382_p0, %p336_p2  ;;  %s374_s29 = sshll.u32 %s3064_s28, 4  ;;  %s3197_s29 = int_to_ptr.vmem [resolvable:$true] %s374_s29 }
  0x1a   : > { %s3796_s3 = sld [smem:[#allocation31_spill]] }
  0x1b   : > { %s3794_s24 = scalar_select %p3182_p3, 1, 0 }
  0x1c   : > { %p2609_p4 = pneg %p3182_p3 }
  0x1e   : > { %p3193_p6 = pnand %p2609_p4, %p3768_p1 }
  0x20   : > { %s3795_s27 = scalar_select %p3193_p6, 1, 0 }
  0x21   : > { %s2733_s13 = scalar_lea.hbm %s3796_s3, 512  ;;  %p3207_p8 = pneg %p3193_p6 }
  0x22   : > { %p2734_p7 = scmp.ne.s32.totalorder %s3796_s3, %s2733_s13  ;;  %p2740_p11 = scmp.lt.u32.totalorder %s2733_s13, %s3796_s3 }
  0x23   : > { %s3797_s16 = scalar_select %p3207_p8, 1, 0 }
  0x24   : > { %p2736_p9 = pnand %p3207_p8, %p2734_p7 }
  0x26   : > { %p2737_p10 = pneg %p2736_p9 }
  0x28   : > { %p2742_p12 = pnand %p2740_p11, %p2737_p10 }
  0x2a   : > { %2745 = shalt.err (!%p2742_p12)
}
  0x2b   : > { %s2746_s30 = scalar_lea.vmem %s3186_s26, 512  ;;  %p2754_p4 = scmp.lt.s32.totalorder %s3186_s26, %s3186_s26 }
  0x2c   : > { %p2747_p13 = scmp.ne.s32.totalorder %s3186_s26, %s2746_s30  ;;  %p2755_p5 = scmp.lt.s32.totalorder %s2746_s30, %s2746_s30 }
  0x2e   : > { %p2749_p0 = pnand %p2747_p13, %p3207_p8  ;;  %p2756_p7 = por %p2755_p5, %p2754_p4 }
  0x30   : > { %p2750_p2 = pneg %p2749_p0 }
  0x32   : > { %p2757_p9 = pnand %p2756_p7, %p2750_p2 }
  0x34   : > { %2760 = shalt.err (!%p2757_p9)
}
  0x35   : > { %s3759_s12 = smov 128   ;;  %s3761_s13 = smov 8  }
  0x36   : > { %2612 = dma.hbm_to_vmem [thread:$0]  (!%p3193_p6), %s3796_s3, 512, %s3186_s26, [#allocation9], %s3759_s12, %s3759_s12, %s3761_s13  }
  0x37   : > { %s3798_s5 = sld [smem:[#allocation32_spill]] }
  0x3d   : > { %s2761_s30 = scalar_lea.hbm %s3798_s5, 512 }
  0x3e   : > { %p2762_p5 = scmp.ne.s32.totalorder %s3798_s5, %s2761_s30  ;;  %p2768_p12 = scmp.lt.u32.totalorder %s2761_s30, %s3798_s5 }
  0x40   : > { %p2764_p10 = pnand %p2762_p5, %p3207_p8 }
  0x42   : > { %p2765_p11 = pneg %p2764_p10 }
  0x44   : > { %p2770_p13 = pnand %p2768_p12, %p2765_p11 }
  0x46   : > { %2773 = shalt.err (!%p2770_p13)
}
  0x47   : > { %s2774_s26 = scalar_lea.vmem %s3197_s29, 512  ;;  %p2782_p7 = scmp.lt.s32.totalorder %s3197_s29, %s3197_s29 }
  0x48   : > { %p2775_p0 = scmp.ne.s32.totalorder %s3197_s29, %s2774_s26  ;;  %p2783_p9 = scmp.lt.s32.totalorder %s2774_s26, %s2774_s26 }
  0x4a   : > { %p2777_p2 = pnand %p2775_p0, %p3207_p8  ;;  %p2784_p5 = por %p2783_p9, %p2782_p7 }
  0x4c   : > { %p2778_p4 = pneg %p2777_p2 }
  0x4e   : > { %p2785_p10 = pnand %p2784_p5, %p2778_p4 }
  0x50   : > { %2788 = shalt.err (!%p2785_p10)
}
  0x51   : > { %2618 = dma.hbm_to_vmem [thread:$0]  (!%p3193_p6), %s3798_s5, 512, %s3197_s29, [#allocation12], %s3759_s12, %s3759_s12, %s3761_s13  }
  0x52   : > { %s2381_s10 = sadd.s32 4294967294, %s3061_s22   ;;  %s48_s11 = sadd.s32 1, %s3057_s21 }
  0x53   : > { %p50_p11 = scmp.ge.s32.totalorder %s48_s11, 2  ;;  %s57_s14 = sadd.s32 1, %s3049_s19 }
  0x54   : > { %p64_p12 = scmp.ne.s32.totalorder %s3049_s19, %s3045_s18  ;;  %p65_p13 = scmp.eq.s32.totalorder %s3061_s22, 0 }
  0x55   : > { %s3842_s11 = smov (%p50_p11, %s48_s11), 0  ;;  %p70_p2 = scmp.ne.s32.totalorder %s3045_s18, %s3041_s17 }
  0x56   : > { %3799 = sst [smem:[#allocation26_spill]] %s3842_s11  ;;  %p3265_p0 = por %p65_p13, %p64_p12 }
  0x57   : > { %s52_s29 = ssub.s32 %s3057_s21, %s3842_s11  ;;  %p295_p4 = scmp.eq.s32.totalorder %s3177_s23, 1 }
  0x58   : > { %p55_p7 = scmp.eq.s32.totalorder %s52_s29, 0  ;;  %p3276_p9 = por %p3768_p1, %p70_p2 }
  0x59   : > { %p3280_p5 = por %p295_p4, %p64_p12  ;;  %p301_p10 = scmp.eq.s32.totalorder %s2381_s10, 1 }
  0x5a   : > { %s3801_s25 = scalar_select %p3276_p9, 1, 0 }
  0x5b   : > { %s3802_s28 = scalar_select %p3280_p5, 1, 0 }
  0x5c   : > { %s3285_s30 = scalar_select %p55_p7, %s3049_s19, %s57_s14  }
  0x5d   : > { %3803 = sst [smem:[#allocation27_spill]] %s3802_s28  ;;  %p3287_p11 = por %p301_p10, %p70_p2 }
  0x5e   : > { %3804 = sst [smem:[#allocation28_spill]] %s3285_s30  ;;  %p2643_p13 = scmp.lt.s32.totalorder %s3061_s22, 2 }
  0x5f   : > { %s3805_s26 = scalar_select %p3287_p11, 1, 0 }
  0x60   : > { %s3763_s8 = sand.u32 1, %s3049_s19   ;;  %s3294_s9 = sshll.u32 %s3057_s21, 7 }
  0x61   : > { %3806 = sst [smem:[#allocation29_spill]] %s3805_s26  ;;  %s3298_s29 = sshll.u32 %s3763_s8, 3 }
  0x62   : > { %p3302_p12 = pnand %p2643_p13, %p3265_p0  ;;  %s429_s10 = sand.u32 1, %s3061_s22  }
  0x63   : > { %s3808_s1 = sld [smem:[#allocation30_spill]]  ;;  %s433_s5 = scalar_lea.vmem [#allocation5], %s3298_s29 }
  0x64   : > { %s3807_s12 = scalar_select %p3302_p12, 1, 0 }
  0x65   : > { %s440_s8 = sshll.u32 %s433_s5, 4  ;;  %s3316_s15 = scalar_lea.sflag [#allocation6], %s429_s10  ;;  %s3314_s8 = int_to_ptr.vmem [resolvable:$true] %s440_s8 }
  0x66   : > { %p3322_p2 = pneg %p3302_p12 }
  0x68   : > { %s3809_s21 = scalar_select %p3322_p2, 1, 0 }
  0x69   : > { %s3311_s3 = scalar_lea.hbm %s3808_s1, %s3294_s9  ;;  %s2794_s30 = scalar_lea.hbm %s3808_s1, 256 }
  0x6a   : > { %s2789_s11 = scalar_lea.hbm %s3311_s3, 128  ;;  %p2795_p10 = scmp.lt.u32.totalorder %s3311_s3, %s3808_s1 }
  0x6b   : > { %p2790_p0 = scmp.ne.s32.totalorder %s3311_s3, %s2789_s11  ;;  %p2796_p13 = scmp.lt.u32.totalorder %s2794_s30, %s2789_s11 }
  0x6c   : > { %p2798_p11 = scmp.lt.u32.totalorder %s2789_s11, %s3311_s3 }
  0x6d   : > { %p2792_p4 = pnand %p3322_p2, %p2790_p0  ;;  %p2797_p1 = por %p2796_p13, %p2795_p10 }
  0x6f   : > { %p2793_p7 = pneg %p2792_p4  ;;  %p2799_p5 = por %p2798_p11, %p2797_p1 }
  0x71   : > { %p2800_p9 = pnand %p2799_p5, %p2793_p7 }
  0x73   : > { %2803 = shalt.err (!%p2800_p9)
}
  0x74   : > { %s2804_s10 = scalar_lea.vmem %s3314_s8, 128  ;;  %s3067_s13 = smov [#allocation5]  }
  0x75   : > { %p2805_p0 = scmp.ne.s32.totalorder %s3314_s8, %s2804_s10  ;;  %s2809_s14 = sshll.u32 %s3067_s13, 4  ;;  %s2810_s14 = int_to_ptr.vmem [resolvable:$false] %s2809_s14 }
  0x76   : > { %s2811_s22 = scalar_lea.vmem %s2810_s14, 256  ;;  %p2812_p6 = scmp.lt.s32.totalorder %s3314_s8, %s2810_s14 }
  0x77   : > { %p2807_p4 = pnand %p2805_p0, %p3322_p2  ;;  %p2813_p8 = scmp.lt.s32.totalorder %s2811_s22, %s2804_s10 }
  0x79   : > { %p2808_p3 = pneg %p2807_p4  ;;  %p2814_p10 = por %p2813_p8, %p2812_p6 }
  0x7b   : > { %p2815_p13 = pnand %p2814_p10, %p2808_p3 }
  0x7d   : > { %2818 = shalt.err (!%p2815_p13)
}
  0x7e   : > { %2628 = dma.hbm_to_vmem [thread:$0]  (!%p3302_p12), %s3311_s3, 128, %s3314_s8, %s3316_s15  }
  0x7f   : > { %s3068_s11 = smov [#allocation10]   ;;  %s3069_s5 = smov [#allocation13]  }
  0x80   : > { %s361_s30 = sshll.u32 %s3068_s11, 4  ;;  %s387_s1 = sshll.u32 %s3069_s5, 4  ;;  %s362_s30 = int_to_ptr.vmem [resolvable:$true] %s361_s30  ;;  %s388_s1 = int_to_ptr.vmem [resolvable:$true] %s387_s1 }
  0x81   : > { %s2819_s14 = scalar_lea.hbm %s3749_s4, 512  ;;  %p3810_p3 = scmp.ne.s32.totalorder %s3797_s16, 0 }
  0x82   : > { %p2820_p1 = scmp.ne.s32.totalorder %s3749_s4, %s2819_s14  ;;  %p2826_p9 = scmp.lt.u32.totalorder %s2819_s14, %s3749_s4 }
  0x84   : > { %p2822_p6 = pnand %p2820_p1, %p3810_p3 }
  0x86   : > { %p2823_p8 = pneg %p2822_p6 }
  0x88   : > { %p2828_p5 = pnand %p2826_p9, %p2823_p8 }
  0x8a   : > { %2831 = shalt.err (!%p2828_p5)
}
  0x8b   : > { %s2832_s3 = scalar_lea.vmem %s362_s30, 512  ;;  %p2840_p4 = scmp.lt.s32.totalorder %s362_s30, %s362_s30 }
  0x8c   : > { %p2833_p11 = scmp.ne.s32.totalorder %s362_s30, %s2832_s3  ;;  %p2841_p10 = scmp.lt.s32.totalorder %s2832_s3, %s2832_s3 }
  0x8e   : > { %p2835_p7 = pnand %p2833_p11, %p3810_p3  ;;  %p2842_p13 = por %p2841_p10, %p2840_p4 }
  0x90   : > { %p2836_p0 = pneg %p2835_p7 }
  0x92   : > { %p2843_p12 = pnand %p2842_p13, %p2836_p0 }
  0x94   : > { %2846 = shalt.err (!%p2843_p12)
}
  0x95   : > { %p3811_p1 = scmp.ne.s32.totalorder %s3795_s27, 0  ;;  %s3812_s26 = smov 8  }
  0x96   : > { %s3813_s8 = smov 128   ;;  %s2847_s13 = scalar_lea.hbm %s3751_s6, 512 }
  0x97   : > { %2615 = dma.hbm_to_vmem [thread:$0]  (!%p3811_p1), %s3749_s4, 512, %s362_s30, [#allocation9], %s3813_s8, %s3813_s8, %s3812_s26  }
  0x98   : > { %p2848_p6 = scmp.ne.s32.totalorder %s3751_s6, %s2847_s13  ;;  %p2854_p9 = scmp.lt.u32.totalorder %s2847_s13, %s3751_s6 }
  0x9a   : > { %p2850_p12 = pnand %p2848_p6, %p3810_p3 }
  0x9c   : > { %p2851_p8 = pneg %p2850_p12 }
  0x9e   : > { %p2856_p5 = pnand %p2854_p9, %p2851_p8 }
  0xa0   : > { %2859 = shalt.err (!%p2856_p5)
}
  0xa1   : > { %s2860_s17 = scalar_lea.vmem %s388_s1, 512  ;;  %p2868_p4 = scmp.lt.s32.totalorder %s388_s1, %s388_s1 }
  0xa2   : > { %p2861_p11 = scmp.ne.s32.totalorder %s388_s1, %s2860_s17  ;;  %p2869_p10 = scmp.lt.s32.totalorder %s2860_s17, %s2860_s17 }
  0xa4   : > { %p2863_p7 = pnand %p2861_p11, %p3810_p3  ;;  %p2870_p13 = por %p2869_p10, %p2868_p4 }
  0xa6   : > { %p2864_p0 = pneg %p2863_p7 }
  0xa8   : > { %p2871_p2 = pnand %p2870_p13, %p2864_p0 }
  0xaa   : > { %2874 = shalt.err (!%p2871_p2)
}
  0xab   : > { %2621 = dma.hbm_to_vmem [thread:$0]  (!%p3811_p1), %s3751_s6, 512, %s388_s1, [#allocation12], %s3813_s8, %s3813_s8, %s3812_s26  }
  0xac   : > { %s3392_s5 = scalar_lea.hbm %s3745_s0, %s3294_s9  ;;  %s414_s27 = scalar_lea.vmem [#allocation2], %s3298_s29 }
  0xad   : > { %s422_s13 = sshll.u32 %s414_s27, 4  ;;  %s3401_s22 = scalar_lea.hbm %s3747_s2, %s3294_s9  ;;  %s3395_s13 = int_to_ptr.vmem [resolvable:$true] %s422_s13 }
  0xae   : > { %s3814_s3 = sand.u32 1, %s3049_s19   ;;  %s2875_s26 = scalar_lea.hbm %s3392_s5, 128 }
  0xaf   : > { %s411_s1 = scalar_lea.sflag [#allocation3], %s3814_s3  ;;  %p2876_p2 = scmp.ne.s32.totalorder %s3392_s5, %s2875_s26 }
  0xb0   : > { %p3815_p3 = scmp.ne.s32.totalorder %s3809_s21, 0  ;;  %s2880_s30 = scalar_lea.hbm %s3745_s0, 256 }
  0xb1   : > { %p2881_p12 = scmp.lt.u32.totalorder %s3392_s5, %s3745_s0  ;;  %p2882_p8 = scmp.lt.u32.totalorder %s2880_s30, %s2875_s26 }
  0xb2   : > { %p2878_p1 = pnand %p2876_p2, %p3815_p3  ;;  %p2884_p5 = scmp.lt.u32.totalorder %s2875_s26, %s3392_s5 }
  0xb3   : > { %p2883_p9 = por %p2882_p8, %p2881_p12 }
  0xb4   : > { %p2879_p6 = pneg %p2878_p1 }
  0xb5   : > { %p2885_p11 = por %p2884_p5, %p2883_p9 }
  0xb7   : > { %p2886_p7 = pnand %p2885_p11, %p2879_p6 }
  0xb9   : > { %2889 = shalt.err (!%p2886_p7)
}
  0xba   : > { %s2890_s9 = scalar_lea.vmem %s3395_s13, 128  ;;  %s3070_s11 = smov [#allocation2]  }
  0xbb   : > { %p2891_p0 = scmp.ne.s32.totalorder %s3395_s13, %s2890_s9  ;;  %s2895_s27 = sshll.u32 %s3070_s11, 4  ;;  %s2896_s27 = int_to_ptr.vmem [resolvable:$false] %s2895_s27 }
  0xbc   : > { %s2897_s14 = scalar_lea.vmem %s2896_s27, 256  ;;  %p2898_p13 = scmp.lt.s32.totalorder %s3395_s13, %s2896_s27 }
  0xbd   : > { %p2893_p4 = pnand %p2891_p0, %p3815_p3  ;;  %p2899_p2 = scmp.lt.s32.totalorder %s2897_s14, %s2890_s9 }
  0xbf   : > { %p2894_p10 = pneg %p2893_p4  ;;  %p2900_p1 = por %p2899_p2, %p2898_p13 }
  0xc1   : > { %p2901_p12 = pnand %p2900_p1, %p2894_p10 }
  0xc3   : > { %2904 = shalt.err (!%p2901_p12)
}
  0xc4   : > { %p3816_p6 = scmp.ne.s32.totalorder %s3807_s12, 0  ;;  %s451_s10 = scalar_lea.vmem [#allocation7], %s3298_s29 }
  0xc5   : > { %s458_s3 = sshll.u32 %s451_s10, 4  ;;  %s2905_s26 = scalar_lea.hbm %s3401_s22, 128  ;;  %s459_s3 = int_to_ptr.vmem [resolvable:$true] %s458_s3 }
  0xc6   : > { %2625 = dma.hbm_to_vmem [thread:$0]  (!%p3816_p6), %s3392_s5, 128, %s3395_s13, %s411_s1  }
  0xc7   : > { %p2906_p8 = scmp.ne.s32.totalorder %s3401_s22, %s2905_s26  ;;  %s2910_s30 = scalar_lea.hbm %s3747_s2, 256 }
  0xc8   : > { %p2911_p11 = scmp.lt.u32.totalorder %s3401_s22, %s3747_s2  ;;  %p2912_p7 = scmp.lt.u32.totalorder %s2910_s30, %s2905_s26 }
  0xc9   : > { %p2908_p9 = pnand %p2906_p8, %p3815_p3  ;;  %p2914_p4 = scmp.lt.u32.totalorder %s2905_s26, %s3401_s22 }
  0xca   : > { %p2913_p0 = por %p2912_p7, %p2911_p11 }
  0xcb   : > { %p2909_p5 = pneg %p2908_p9 }
  0xcc   : > { %p2915_p10 = por %p2914_p4, %p2913_p0 }
  0xce   : > { %p2916_p13 = pnand %p2915_p10, %p2909_p5 }
  0xd0   : > { %2919 = shalt.err (!%p2916_p13)
}
  0xd1   : > { %s2920_s29 = scalar_lea.vmem %s459_s3, 128  ;;  %s3071_s5 = smov [#allocation7]  }
  0xd2   : > { %p2921_p2 = scmp.ne.s32.totalorder %s459_s3, %s2920_s29  ;;  %s2925_s13 = sshll.u32 %s3071_s5, 4  ;;  %s2926_s13 = int_to_ptr.vmem [resolvable:$false] %s2925_s13 }
  0xd3   : > { %s2927_s1 = scalar_lea.vmem %s2926_s13, 256  ;;  %p2928_p8 = scmp.lt.s32.totalorder %s459_s3, %s2926_s13 }
  0xd4   : > { %p2923_p1 = pnand %p2921_p2, %p3815_p3  ;;  %p2929_p9 = scmp.lt.s32.totalorder %s2927_s1, %s2920_s29 }
  0xd6   : > { %p2924_p12 = pneg %p2923_p1  ;;  %p2930_p6 = por %p2929_p9, %p2928_p8 }
  0xd8   : > { %p2931_p7 = pnand %p2930_p6, %p2924_p12 }
  0xda   : > { %2934 = shalt.err (!%p2931_p7)
}
  0xdb   : > { %p3817_p11 = scmp.ne.s32.totalorder %s3807_s12, 0  ;;  %p3818_p5 = scmp.ne.s32.totalorder %s3794_s24, 0 }
  0xdc   : > { %s3448_s21 = sand.u32 (!%p3818_p5), 1, %s3045_s18   ;;  %p3819_p3 = scmp.ne.s32.totalorder (!%p3818_p5), %s3801_s25, 0 }
  0xdd   : > { %2631 = dma.hbm_to_vmem [thread:$0]  (!%p3817_p11), %s3401_s22, 128, %s459_s3, %s3316_s15  }
  0xde   : > { %467 = sbr.rel (%p3818_p5) target bundleno = 2050 (0x802), region = 60  ;;  %s3451_s9 = sshll.u32 (!%p3818_p5), %s3448_s21, 3 }
  0xdf   : > { %s470_s11 = scalar_lea.sflag (!%p3818_p5), [#allocation3], %s3448_s21  ;;  %s473_s27 = scalar_lea.vmem (!%p3818_p5), [#allocation2], %s3451_s9 }
  0xe5   : > { %3016 = dma.done.wait (%p3819_p3), %s470_s11, 128  }
  0xe6   : > { %3018 = vsyncadd (%p3819_p3), %s470_s11, 4294967168  ;;  %s478_s24 = sand.u32 1, %s3177_s23   ;;  %s482_s15 = scalar_lea.vmem [#allocation5], %s3451_s9 }
  0xe7   : > { %s479_s12 = scalar_lea.sflag [#allocation6], %s478_s24 }
  0xe8   : > { %3020 = dma.done.wait (%p3819_p3), %s479_s12, 256  }
  0xe9   : > { %3022 = vsyncadd (%p3819_p3), %s479_s12, 4294967040  ;;  %s491_s22 = scalar_lea.vmem [#allocation7], %s3451_s9  ;;  %p3820_p6 = scmp.eq.s32.totalorder %s3177_s23, 0 }
  0xeb   : > { %3024 = dma.done.wait (%p3820_p6), [#allocation9], 1024   ;;  %p3821_p0 = pmov %p3820_p6 }
  0xed   : > { %3026 = vsyncadd (%p3821_p0), [#allocation9], 4294966272  ;;  %p3822_p4 = pmov %p3821_p0 }
  0xee   : > { %p3823_p10 = pmov %p3821_p0 }
  0xef   : > { %3028 = dma.done.wait (%p3822_p4), [#allocation12], 1024  }
  0xf0   : > { %3030 = vsyncadd (%p3823_p10), [#allocation12], 4294966272  ;;  %v3072_v0 = vmov 0.0|0.0   ;;  %vm3073_vm0 = vmmov 0   ;;  %v3074_v1 = vmov 0.0   ;;  %v642_v2 = vld [vmem:[#allocation10] sm:$0xff]  ;;  %v811_v29 = vlaneseq }
  0xf1   : > { %2565 = vmatprep.subr.bf16.mxu1 %v3072_v0  ;;  %2559 = vmatprep.subr.bf16.mxu0 %v3072_v0  ;;  %v643_v3 = vld [vmem:[#allocation10 + $0x8] sm:$0xff]  ;;  %v564_v4 = vld [vmem:[#allocation8] sm:$0xff]  ;;  %v644_v7 = vld [vmem:[#allocation10 + $0x10] sm:$0xff]  ;;  %vm568_vm1 = vcmask 261120   ;;  %s3075_s23 = smov 104   ;;  %s3076_s25 = smov 120  }
  0xf2   : > { %2494 = vmatprep.mubr.msk.f32.mxu1 %vm3073_vm0, %v3074_v1  ;;  %2483 = vmatprep.mubr.msk.f32.mxu0 %vm3073_vm0, %v3074_v1  ;;  %v2566_v5 = vpack.c.bf16 %v643_v3, %v642_v2  ;;  %v565_v6 = vld [vmem:[#allocation8 + $0x8] sm:$0xff]  ;;  %v645_v8 = vld [vmem:[#allocation10 + $0x18] sm:$0xff]  ;;  %v566_v10 = vld [vmem:[#allocation8 + $0x10] sm:$0xff]  ;;  %s3077_s14 = smov 112   ;;  %v3078_v27 = vmov 1983009808  }
  0xf3   : > { %v2560_v9 = vpack.c.bf16 %v565_v6, %v564_v4  ;;  %v567_v11 = vld [vmem:[#allocation8 + $0x18] sm:$0xff]  ;;  %v2569_v12 = vpack.c.bf16 %v645_v8, %v644_v7  ;;  %v562_v14 = vld [vmem:[%s482_s15] sm:$0xff]  ;;  %v721_v22 = vld [vmem:[#allocation11 + $0x10] sm:$0xff]  ;;  %v809_v28 = vunpack.c.l.s4 %v3078_v27  ;;  %v3079_v30 = vmov 1934713408   ;;  %s2403_s10 = sshll.u32 %s3448_s21, 5 }
  0xf4   : > { %2567 = vmatpush3.bf16.msra.mxu1 %v2566_v5  ;;  %v2563_v13 = vpack.c.bf16 %v567_v11, %v566_v10  ;;  %v3486_v15 = vld [vmem:[%s473_s27] sm:$0xff]  ;;  %v719_v20 = vld [vmem:[#allocation11] sm:$0xff]  ;;  %v720_v21 = vld [vmem:[#allocation11 + $0x8] sm:$0xff]  ;;  %v841_v31 = vunpack.c.l.s4 %v3079_v30  ;;  %v812_v33 = vshrl.u32 %v811_v29, 7  ;;  %vm1234_vm2 = vcmask 64512   ;;  %s3583_s3 = scalar_lea.vmem [#allocation15], %s2403_s10 }
  0xf5   : > { %2561 = vmatpush3.bf16.msra.mxu0 %v2560_v9  ;;  %2568 = vmatprep.subr.bf16.mxu1 %v3072_v0  ;;  %v2572_v23 = vpack.c.bf16 %v720_v21, %v719_v20  ;;  %v722_v24 = vld [vmem:[#allocation11 + $0x18] sm:$0xff]  ;;  %v810_v32 = vunpack.c.0.s8 %v809_v28  ;;  %s3080_s26 = smov 16   ;;  %s3081_s8 = smov 8   ;;  %vm2028_vm3 = vcmask 130048   ;;  %vm2030_vm4 = vcmask 195584  }
  0xf6   : > { %2562 = vmatprep.subr.bf16.mxu0 %v3072_v0  ;;  %v2575_v25 = vpack.c.bf16 %v722_v24, %v721_v22  ;;  %v563_v26 = vld [vmem:[%s491_s22] sm:$0xff]  ;;  %v842_v36 = vunpack.c.0.s8 %v841_v31  ;;  %s3082_s17 = smov 24   ;;  %s3824_s16 = sld [smem:[#allocation27_spill]] }
  0xf7   : > { %v3510_v37 = vsub.s32 %v810_v32, %v812_v33  ;;  %s2438_s29 = sshll.u32 %s3053_s20, 9  ;;  %s2182_s5 = sshll.u32 %s3583_s3, 4  ;;  %s3656_s5 = int_to_ptr.vmem [resolvable:$true] %s2182_s5 }
  0xf8   : > { %2570 = vmatpush3.bf16.msra.mxu1 %v2569_v12  ;;  %v3512_v44 = vsub.s32 %v842_v36, %v812_v33  ;;  %s3825_s11 = sld [smem:[#allocation36_spill]]  ;;  %s2154_s24 = scalar_lea.sflag [#allocation16], %s3448_s21 }
  0xf9   : > { %2564 = vmatpush3.bf16.msra.mxu0 %v2563_v13  ;;  %2508 = vmatprep.subr.mxu1 %v3074_v1  ;;  %s2935_s12 = scalar_lea.vmem %s3656_s5, 512  ;;  %s3083_s15 = smov [#allocation15]  }
  0xfa   : > { %2571 = vmatprep.subr.bf16.mxu0 %v3072_v0  ;;  %p2936_p13 = scmp.ne.s32.totalorder %s3656_s5, %s2935_s12  ;;  %s2939_s22 = sshll.u32 %s3083_s15, 4  ;;  %s2940_s22 = int_to_ptr.vmem [resolvable:$false] %s2939_s22 }
  0xfb   : > { %2495 = vmatmul.mubr.msk.f32.vlgmr.msra.gmra.mrb[0].mxu1 %vm568_vm1, %v562_v14  ;;  %p2942_p8 = scmp.lt.s32.totalorder %s3656_s5, %s2940_s22 }
  0xfc   : > { %2484 = vmatmul.mubr.msk.f32.vlgmr.msra.gmra.mrb[0].mxu0 %vm568_vm1, %v3486_v15  ;;  %2510 = vmatprep.mubr.msk.f32.mxu1 %vm3073_vm0, %v3074_v1  ;;  %p3826_p2 = scmp.ne.s32.totalorder %s3824_s16, 0 }
  0xfd   : > { %2505 = vmatprep.mubr.msk.f32.mxu0 %vm3073_vm0, %v3074_v1  ;;  %2573 = vmatpush3.bf16.msra.mxu0 %v2572_v23 }
  0xfe   : > { %2574 = vmatprep.subr.bf16.mxu0 %v3072_v0  ;;  %s3654_s27 = scalar_lea.hbm %s3825_s11, %s2438_s29  ;;  %p2937_p1 = pnand %p2936_p13, %p3826_p2 }
 0x100   : > { %p2938_p12 = pneg %p2937_p1 }
 0x101   : > { %2576 = vmatpush3.bf16.msra.mxu0 %v2575_v25 }
 0x102   : > { %2528 = vmatprep.subr.mxu0 %v3074_v1 }
 0x104   : > { %2506 = vmatmul.mubr.msk.f32.vlgmr.msra.gmra.mrb[2].mxu0 %vm568_vm1, %v563_v26 }
 0x105   : > { %2530 = vmatprep.mubr.msk.f32.mxu0 %vm3073_vm0, %v3074_v1 }
 0x1ce   : > { %v715_v16 = vpop.f32.mrb[0].mxu1 }
 0x1cf   : > { %949 = vrot.lane.b32.xlu1 %v715_v16, %s3075_s23  ;;  %943 = vrot.lane.b32.xlu0 %v715_v16, %s3076_s25  ;;  %v2496_v17 = vpop.f32.mrb[1].mxu1  ;;  %v638_v18 = vpop.f32.mrb[0].mxu0 }
 0x1d0   : > { %v2485_v19 = vpop.f32.mrb[1].mxu0 }
 0x1d3   : > { %946 = vrot.lane.b32.xlu0 %v715_v16, %s3077_s14  ;;  %797 = vrot.lane.b32.xlu1 %v638_v18, %s3076_s25 }
 0x1d7   : > { %800 = vrot.lane.b32.xlu0 %v638_v18, %s3077_s14  ;;  %803 = vrot.lane.b32.xlu1 %v638_v18, %s3075_s23 }
 0x241   : > { %v950_v34 = vpop.permute.xlu1 %949  ;;  %v944_v35 = vpop.permute.xlu0 %943 }
 0x242   : > { %v968_v38 = vcombine.low %v944_v35, %v950_v34  ;;  %v969_v39 = vcombine.high %v944_v35, %v950_v34 }
 0x244   : > { %v976_v45 = vrot.slane %v968_v38, %v3510_v37  ;;  %v983_v46 = vrot.slane %v969_v39, %v3510_v37 }
 0x245   : > { %v947_v40 = vpop.permute.xlu0 %946  ;;  %v798_v41 = vpop.permute.xlu1 %797 }
 0x246   : > { %v952_v42 = vcombine.low %v715_v16, %v947_v40  ;;  %v953_v43 = vcombine.high %v715_v16, %v947_v40 }
 0x248   : > { %v960_v47 = vrot.slane %v952_v42, %v3510_v37  ;;  %v967_v48 = vrot.slane %v953_v43, %v3510_v37 }
 0x249   : > { %v801_v49 = vpop.permute.xlu0 %800  ;;  %v804_v50 = vpop.permute.xlu1 %803 }
 0x24a   : > { %v984_v51 = vcombine.low %v960_v47, %v976_v45  ;;  %v985_v52 = vcombine.high %v960_v47, %v976_v45  ;;  %v1000_v53 = vcombine.low %v967_v48, %v983_v46  ;;  %v1001_v54 = vcombine.high %v967_v48, %v983_v46 }
 0x24b   : > { %v806_v55 = vcombine.low %v638_v18, %v801_v49  ;;  %v807_v56 = vcombine.high %v638_v18, %v801_v49  ;;  %v822_v57 = vcombine.low %v798_v41, %v804_v50  ;;  %v823_v58 = vcombine.high %v798_v41, %v804_v50 }
 0x24c   : > { %v992_v59 = vrot.slane %v984_v51, %v3512_v44  ;;  %v999_v60 = vrot.slane %v985_v52, %v3512_v44  ;;  %v1008_v61 = vrot.slane %v1000_v53, %v3512_v44  ;;  %v1015_v62 = vrot.slane %v1001_v54, %v3512_v44 }
 0x24d   : > { %v814_v63 = vrot.slane %v806_v55, %v3510_v37  ;;  %v821_v2 = vrot.slane %v807_v56, %v3510_v37  ;;  %v830_v3 = vrot.slane %v822_v57, %v3510_v37  ;;  %v837_v4 = vrot.slane %v823_v58, %v3510_v37  ;;  %v3566_v56 = vpop.f32.mrb[2].mxu0 }
 0x24e   : > { %v1020_v5 = vcombine.low %v992_v59, %v999_v60  ;;  %v2409_v6 = vcombine.high %v992_v59, %v999_v60  ;;  %v1036_v7 = vcombine.low %v1008_v61, %v1015_v62  ;;  %v2410_v8 = vcombine.high %v1008_v61, %v1015_v62  ;;  %v2507_v57 = vpop.f32.mrb[3].mxu0 }
 0x24f   : > { %v838_v9 = vcombine.low %v814_v63, %v830_v3  ;;  %v839_v10 = vcombine.high %v814_v63, %v830_v3  ;;  %v854_v11 = vcombine.low %v821_v2, %v837_v4  ;;  %v855_v12 = vcombine.high %v821_v2, %v837_v4 }
 0x250   : > { %v1027_v13 = vrot.slane %v1020_v5, %v3510_v37  ;;  %v1035_v14 = vrot.slane %v2409_v6, %v3510_v37  ;;  %v1043_v16 = vrot.slane %v1036_v7, %v3510_v37  ;;  %v1051_v17 = vrot.slane %v2410_v8, %v3510_v37 }
 0x251   : > { %v846_v18 = vrot.slane %v838_v9, %v3512_v44  ;;  %v853_v19 = vrot.slane %v839_v10, %v3512_v44  ;;  %v862_v20 = vrot.slane %v854_v11, %v3512_v44  ;;  %v869_v21 = vrot.slane %v855_v12, %v3512_v44 }
 0x252   : > { %v1052_v22 = vcombine.low %v1027_v13, %v1035_v14  ;;  %v1068_v23 = vcombine.low %v1043_v16, %v1051_v17  ;;  %v1053_v38 = vcombine.high %v1027_v13, %v1035_v14  ;;  %v1069_v39 = vcombine.high %v1043_v16, %v1051_v17 }
 0x253   : > { %v874_v24 = vcombine.low %v846_v18, %v853_v19  ;;  %v2407_v25 = vcombine.high %v846_v18, %v853_v19  ;;  %v890_v26 = vcombine.low %v862_v20, %v869_v21  ;;  %v2408_v27 = vcombine.high %v862_v20, %v869_v21 }
 0x254   : > { %v1060_v28 = vrot.slane %v1052_v22, %v3512_v44  ;;  %v1076_v29 = vrot.slane %v1068_v23, %v3512_v44  ;;  %v1067_v47 = vrot.slane %v1053_v38, %v3512_v44  ;;  %v1083_v48 = vrot.slane %v1069_v39, %v3512_v44 }
 0x255   : > { %v881_v30 = vrot.slane %v874_v24, %v3510_v37  ;;  %v889_v31 = vrot.slane %v2407_v25, %v3510_v37  ;;  %v897_v32 = vrot.slane %v890_v26, %v3510_v37  ;;  %v905_v33 = vrot.slane %v2408_v27, %v3510_v37 }
 0x256   : > { %v1084_v34 = vcombine.low %v1060_v28, %v1076_v29  ;;  %v1085_v46 = vcombine.high %v1060_v28, %v1076_v29  ;;  %v1086_v52 = vcombine.low %v1067_v47, %v1083_v48  ;;  %v1087_v54 = vcombine.high %v1067_v47, %v1083_v48 }
 0x257   : > { %v906_v35 = vcombine.low %v881_v30, %v889_v31  ;;  %v922_v36 = vcombine.low %v897_v32, %v905_v33  ;;  %v907_v42 = vcombine.high %v881_v30, %v889_v31  ;;  %v923_v43 = vcombine.high %v897_v32, %v905_v33 }
 0x258   : > { %2509 = vmatpush3.xpose.msk.msra.mxu1 %vm1234_vm2, %v1084_v34 }
 0x259   : > { %2513 = vmatprep.subr.mxu1 %v3074_v1  ;;  %v914_v40 = vrot.slane %v906_v35, %v3512_v44  ;;  %v930_v41 = vrot.slane %v922_v36, %v3512_v44  ;;  %v921_v50 = vrot.slane %v907_v42, %v3512_v44  ;;  %v937_v51 = vrot.slane %v923_v43, %v3512_v44 }
 0x25b   : > { %v938_v45 = vcombine.low %v914_v40, %v930_v41  ;;  %v939_v49 = vcombine.high %v914_v40, %v930_v41  ;;  %v940_v53 = vcombine.low %v921_v50, %v937_v51  ;;  %v941_v55 = vcombine.high %v921_v50, %v937_v51 }
 0x25d   : > { %2511 = vmatmul.mubr.msk.f32.vlgmr.msra.gmra.mrb[2].mxu1 %vm1234_vm2, %v938_v45 }
 0x25e   : > { %2514 = vmatpush3.xpose.msk.msra.mxu1 %vm1234_vm2, %v1085_v46  ;;  %2515 = vmatprep.mubr.msk.f32.mxu1 %vm3073_vm0, %v3074_v1 }
 0x25f   : > { %2518 = vmatprep.subr.mxu1 %v3074_v1 }
 0x261   : > { %2516 = vmatmul.mubr.msk.f32.vlgmr.msra.gmra.mrb[4].mxu1 %vm1234_vm2, %v939_v49 }
 0x262   : > { %2519 = vmatpush3.xpose.msk.msra.mxu1 %vm1234_vm2, %v1086_v52  ;;  %2520 = vmatprep.mubr.msk.f32.mxu1 %vm3073_vm0, %v3074_v1 }
 0x263   : > { %2523 = vmatprep.subr.mxu1 %v3074_v1 }
 0x265   : > { %2521 = vmatmul.mubr.msk.f32.vlgmr.msra.gmra.mrb[6].mxu1 %vm1234_vm2, %v940_v53 }
 0x266   : > { %2524 = vmatpush3.xpose.msk.msra.mxu1 %vm1234_vm2, %v1087_v54  ;;  %2525 = vmatprep.mubr.msk.f32.mxu1 %vm3073_vm0, %v3074_v1 }
 0x267   : > { %2533 = vmatprep.subr.mxu1 %v3074_v1 }
 0x269   : > { %2526 = vmatmul.mubr.msk.f32.vlgmr.msra.gmra.mrb[8].mxu1 %vm1234_vm2, %v941_v55 }
 0x26a   : > { %2535 = vmatprep.mubr.msk.f32.mxu1 %vm3073_vm0, %v3074_v1 }
 0x330   : > { %v1307_v58 = vpop.f32.mrb[2].mxu1 }
 0x331   : > { %v2512_v59 = vpop.f32.mrb[3].mxu1  ;;  %v1539_v60 = vsel %vm1234_vm2, %v1307_v58, -inf }
 0x332   : > { %1540 = vmax.xlane.f32.xlu0 %v1539_v60 }
 0x334   : > { %v1383_v61 = vpop.f32.mrb[4].mxu1 }
 0x335   : > { %v2517_v62 = vpop.f32.mrb[5].mxu1  ;;  %v1542_v63 = vsel %vm1234_vm2, %v1383_v61, -inf }
 0x336   : > { %1543 = vmax.xlane.f32.xlu1 %v1542_v63 }
 0x338   : > { %v1459_v2 = vpop.f32.mrb[6].mxu1 }
 0x339   : > { %v2522_v3 = vpop.f32.mrb[7].mxu1  ;;  %v1545_v4 = vsel %vm1234_vm2, %v1459_v2, -inf }
 0x33a   : > { %1546 = vmax.xlane.f32.xlu0 %v1545_v4 }
 0x33c   : > { %v1535_v5 = vpop.f32.mrb[8].mxu1 }
 0x33d   : > { %v2527_v6 = vpop.f32.mrb[9].mxu1  ;;  %v1548_v7 = vsel %vm1234_vm2, %v1535_v5, -inf }
 0x33e   : > { %1549 = vmax.xlane.f32.xlu0 %v1548_v7 }
 0x347   : > { %1089 = vrot.lane.b32.xlu1 %v3566_v56, %s3076_s25 }
 0x3bf   : > { %v1541_v8 = vpop.xlane.xlu0 %1540 }
 0x3c0   : > { %v1551_v9 = vsub.f32 %v1307_v58, %v1541_v8 }
 0x3c2   : > { %v1555_v10 = vmul.f32 1.442695, %v1551_v9 }
 0x3c3   : > { %v1544_v11 = vpop.xlane.xlu1 %1543 }
 0x3c4   : > { %2715 = vpow2.f32 %v1555_v10  ;;  %v1552_v12 = vsub.f32 %v1383_v61, %v1544_v11 }
 0x3c6   : > { %v1557_v13 = vmul.f32 1.442695, %v1552_v12 }
 0x3c7   : > { %v1547_v14 = vpop.xlane.xlu0 %1546  ;;  %v1090_v29 = vpop.permute.xlu1 %1089 }
 0x3c8   : > { %2717 = vpow2.f32 %v1557_v13  ;;  %v1553_v16 = vsub.f32 %v1459_v2, %v1547_v14 }
 0x3ca   : > { %v1559_v17 = vmul.f32 1.442695, %v1553_v16 }
 0x3cb   : > { %v1550_v18 = vpop.xlane.xlu0 %1549 }
 0x3cc   : > { %2719 = vpow2.f32 %v1559_v17  ;;  %v1554_v19 = vsub.f32 %v1535_v5, %v1550_v18 }
 0x3ce   : > { %v2716_v20 = vpop.eup %2715  ;;  %v1561_v21 = vmul.f32 1.442695, %v1554_v19 }
 0x3cf   : > { %v1563_v22 = vsel %vm1234_vm2, %v2716_v20, 0.0 }
 0x3d0   : > { %2721 = vpow2.f32 %v1561_v21  ;;  %1564 = vadd.xlane.f32.xlu1 %v1563_v22  ;;  %v2032_v21 = vld [vmem:[#allocation13] sm:$0xff]  ;;  %v2033_v22 = vld [vmem:[#allocation13 + $0x8] sm:$0xff] }
 0x3d2   : > { %v2718_v23 = vpop.eup %2717 }
 0x3d3   : > { %v1566_v24 = vsel %vm1234_vm2, %v2718_v23, 0.0 }
 0x3d4   : > { %1567 = vadd.xlane.f32.xlu0 %v1566_v24 }
 0x3d6   : > { %v2720_v25 = vpop.eup %2719 }
 0x3d7   : > { %v1569_v26 = vsel %vm1234_vm2, %v2720_v25, 0.0 }
 0x3d8   : > { %1570 = vadd.xlane.f32.xlu1 %v1569_v26 }
 0x3da   : > { %v2722_v27 = vpop.eup %2721 }
 0x3db   : > { %v1572_v28 = vsel %vm1234_vm2, %v2722_v27, 0.0 }
 0x3dc   : > { %1573 = vadd.xlane.f32.xlu0 %v1572_v28 }
 0x3e9   : > { %1095 = vrot.lane.b32.xlu1 %v3566_v56, %s3075_s23  ;;  %s2941_s23 = scalar_lea.vmem %s2940_s22, 1024 }
 0x3ea   : > { %p2943_p9 = scmp.lt.s32.totalorder %s2941_s23, %s2935_s12 }
 0x3ec   : > { %p2944_p7 = por %p2943_p9, %p2942_p8 }
 0x3ee   : > { %p2945_p11 = pnand %p2944_p7, %p2938_p12 }
 0x3f2   : > { %1092 = vrot.lane.b32.xlu0 %v3566_v56, %s3077_s14 }
 0x45d   : > { %v1565_v30 = vpop.xlane.xlu1 %1564 }
 0x45e   : > { %2723 = vrcp.f32 %v1565_v30 }
 0x461   : > { %v1568_v31 = vpop.xlane.xlu0 %1567 }
 0x462   : > { %2725 = vrcp.f32 %v1568_v31 }
 0x465   : > { %v1571_v32 = vpop.xlane.xlu1 %1570 }
 0x466   : > { %2727 = vrcp.f32 %v1571_v32 }
 0x468   : > { %v2724_v33 = vpop.eup %2723 }
 0x469   : > { %v1579_v34 = vmul.f32 %v2724_v33, %v2716_v20  ;;  %v1574_v35 = vpop.xlane.xlu0 %1573  ;;  %v1096_v36 = vpop.permute.xlu1 %1095 }
 0x46a   : > { %2729 = vrcp.f32 %v1574_v35  ;;  %v1114_v39 = vcombine.low %v1090_v29, %v1096_v36  ;;  %v1115_v40 = vcombine.high %v1090_v29, %v1096_v36 }
 0x46b   : > { %1583 = vst.msk [vmem:[%s3583_s3] sm:$0xff] %vm1234_vm2, %v1579_v34 }
 0x46c   : > { %v2726_v38 = vpop.eup %2725  ;;  %v1122_v47 = vrot.slane %v1114_v39, %v3510_v37  ;;  %v1129_v48 = vrot.slane %v1115_v40, %v3510_v37 }
 0x46d   : > { %v1580_v41 = vmul.f32 %v2726_v38, %v2718_v23  ;;  %v1093_v42 = vpop.permute.xlu0 %1092  ;;  %v2578_v23 = vpack.c.bf16 %v2033_v22, %v2032_v21 }
 0x46e   : > { %v1098_v43 = vcombine.low %v3566_v56, %v1093_v42  ;;  %v1099_v45 = vcombine.high %v3566_v56, %v1093_v42 }
 0x46f   : > { %1584 = vst.msk [vmem:[%s3583_s3 + $0x8] sm:$0xff] %vm1234_vm2, %v1580_v41 }
 0x470   : > { %v2728_v46 = vpop.eup %2727  ;;  %v1106_v49 = vrot.slane %v1098_v43, %v3510_v37  ;;  %v1113_v50 = vrot.slane %v1099_v45, %v3510_v37  ;;  %v2034_v43 = vld [vmem:[#allocation13 + $0x10] sm:$0xff]  ;;  %v2035_v45 = vld [vmem:[#allocation13 + $0x18] sm:$0xff] }
 0x471   : > { %v1581_v51 = vmul.f32 %v2728_v46, %v2720_v25 }
 0x472   : > { %v1130_v52 = vcombine.low %v1106_v49, %v1122_v47  ;;  %v1131_v53 = vcombine.high %v1106_v49, %v1122_v47  ;;  %v1146_v54 = vcombine.low %v1113_v50, %v1129_v48  ;;  %v1147_v55 = vcombine.high %v1113_v50, %v1129_v48 }
 0x473   : > { %1585 = vst.msk [vmem:[%s3583_s3 + $0x10] sm:$0xff] %vm1234_vm2, %v1581_v51  ;;  %v2581_v50 = vpack.c.bf16 %v2035_v45, %v2034_v43 }
 0x474   : > { %v2730_v56 = vpop.eup %2729  ;;  %v1138_v57 = vrot.slane %v1130_v52, %v3512_v44  ;;  %v1145_v58 = vrot.slane %v1131_v53, %v3512_v44  ;;  %v1154_v59 = vrot.slane %v1146_v54, %v3512_v44  ;;  %v1161_v60 = vrot.slane %v1147_v55, %v3512_v44 }
 0x475   : > { %v1582_v61 = vmul.f32 %v2730_v56, %v2722_v27 }
 0x476   : > { %v1166_v62 = vcombine.low %v1138_v57, %v1145_v58  ;;  %v2411_v63 = vcombine.high %v1138_v57, %v1145_v58  ;;  %v1182_v2 = vcombine.low %v1154_v59, %v1161_v60  ;;  %v2412_v3 = vcombine.high %v1154_v59, %v1161_v60 }
 0x477   : > { %1586 = vst.msk [vmem:[%s3583_s3 + $0x18] sm:$0xff] %vm1234_vm2, %v1582_v61 }
 0x478   : > { %v1173_v4 = vrot.slane %v1166_v62, %v3510_v37  ;;  %v1181_v5 = vrot.slane %v2411_v63, %v3510_v37  ;;  %v1189_v6 = vrot.slane %v1182_v2, %v3510_v37  ;;  %v1197_v7 = vrot.slane %v2412_v3, %v3510_v37 }
 0x47a   : > { %v1198_v8 = vcombine.low %v1173_v4, %v1181_v5  ;;  %v1214_v9 = vcombine.low %v1189_v6, %v1197_v7  ;;  %v1199_v10 = vcombine.high %v1173_v4, %v1181_v5  ;;  %v1215_v11 = vcombine.high %v1189_v6, %v1197_v7 }
 0x47c   : > { %v1206_v12 = vrot.slane %v1198_v8, %v3512_v44  ;;  %v1222_v13 = vrot.slane %v1214_v9, %v3512_v44  ;;  %v1213_v14 = vrot.slane %v1199_v10, %v3512_v44  ;;  %v1229_v16 = vrot.slane %v1215_v11, %v3512_v44 }
 0x47e   : > { %v1230_v17 = vcombine.low %v1206_v12, %v1222_v13  ;;  %v1231_v18 = vcombine.high %v1206_v12, %v1222_v13  ;;  %v1232_v19 = vcombine.low %v1213_v14, %v1229_v16  ;;  %v1233_v20 = vcombine.high %v1213_v14, %v1229_v16  ;;  %v2427_v13 = vld [vmem:[%s3752_s7] ss:$0 sm:$0xff] }
 0x480   : > { %2529 = vmatpush3.msra.mxu0 %v1230_v17  ;;  %2534 = vmatpush3.msra.mxu1 %v1231_v18 }
 0x481   : > { %2531 = vmatmul.mubr.msk.f32.vlgmr.msra.gmra.mrb[4].mxu0 %vm1234_vm2, %v1579_v34  ;;  %2536 = vmatmul.mubr.msk.f32.vlgmr.msra.gmra.mrb[10].mxu1 %vm1234_vm2, %v1580_v41 }
 0x482   : > { %2538 = vmatprep.subr.mxu0 %v3074_v1  ;;  %2543 = vmatprep.subr.mxu1 %v3074_v1 }
 0x483   : > { %2539 = vmatpush3.msra.mxu0 %v1232_v19  ;;  %2544 = vmatpush3.msra.mxu1 %v1233_v20 }
 0x484   : > { %2540 = vmatprep.mubr.msk.f32.mxu0 %vm3073_vm0, %v3074_v1  ;;  %2545 = vmatprep.mubr.msk.f32.mxu1 %vm3073_vm0, %v3074_v1 }
 0x485   : > { %2541 = vmatmul.mubr.msk.f32.vlgmr.msra.gmra.mrb[6].mxu0 %vm1234_vm2, %v1581_v51  ;;  %2546 = vmatmul.mubr.msk.f32.vlgmr.msra.gmra.mrb[12].mxu1 %vm1234_vm2, %v1582_v61 }
 0x486   : > { %2577 = vmatprep.subr.bf16.mxu0 %v3072_v0  ;;  %2556 = vmatprep.mubr.msk.f32.mxu0 %vm3073_vm0, %v3074_v1 }
 0x487   : > { %2579 = vmatpush3.bf16.msra.mxu0 %v2578_v23 }
 0x488   : > { %2580 = vmatprep.subr.bf16.mxu0 %v3072_v0 }
 0x48b   : > { %2582 = vmatpush3.bf16.msra.mxu0 %v2581_v50 }
 0x554   : > { %v1656_v24 = vpop.f32.mrb[4].mxu0  ;;  %v1729_v25 = vpop.f32.mrb[10].mxu1 }
 0x555   : > { %v2532_v26 = vpop.f32.mrb[5].mxu0  ;;  %v2537_v27 = vpop.f32.mrb[11].mxu1 }
 0x558   : > { %v1802_v28 = vpop.f32.mrb[6].mxu0  ;;  %v1875_v29 = vpop.f32.mrb[12].mxu1 }
 0x559   : > { %v1879_v30 = vcombine.low %v1656_v24, %v1802_v28  ;;  %v1880_v31 = vcombine.high %v1656_v24, %v1802_v28  ;;  %v1895_v32 = vcombine.low %v1729_v25, %v1875_v29  ;;  %v1896_v33 = vcombine.high %v1729_v25, %v1875_v29  ;;  %v2542_v34 = vpop.f32.mrb[7].mxu0  ;;  %v2547_v35 = vpop.f32.mrb[13].mxu1 }
 0x55b   : > { %v1887_v1 = vrot.slane %v1879_v30, %v3510_v37  ;;  %v1894_v36 = vrot.slane %v1880_v31, %v3510_v37  ;;  %v1903_v38 = vrot.slane %v1895_v32, %v3510_v37  ;;  %v1910_v0 = vrot.slane %v1896_v33, %v3510_v37 }
 0x55d   : > { %v1911_v39 = vcombine.low %v1887_v1, %v1903_v38  ;;  %v1912_v40 = vcombine.high %v1887_v1, %v1903_v38  ;;  %v1927_v41 = vcombine.low %v1894_v36, %v1910_v0  ;;  %v1928_v42 = vcombine.high %v1894_v36, %v1910_v0 }
 0x55f   : > { %v1919_v46 = vrot.slane %v1911_v39, %v3512_v44  ;;  %v1926_v47 = vrot.slane %v1912_v40, %v3512_v44  ;;  %v1935_v48 = vrot.slane %v1927_v41, %v3512_v44  ;;  %v1942_v49 = vrot.slane %v1928_v42, %v3512_v44 }
 0x561   : > { %v1947_v51 = vcombine.low %v1919_v46, %v1926_v47  ;;  %v2425_v52 = vcombine.high %v1919_v46, %v1926_v47  ;;  %v1963_v53 = vcombine.low %v1935_v48, %v1942_v49  ;;  %v2426_v54 = vcombine.high %v1935_v48, %v1942_v49 }
 0x563   : > { %v1954_v55 = vrot.slane %v1947_v51, %v3510_v37  ;;  %v1962_v56 = vrot.slane %v2425_v52, %v3510_v37  ;;  %v1970_v57 = vrot.slane %v1963_v53, %v3510_v37  ;;  %v1978_v58 = vrot.slane %v2426_v54, %v3510_v37 }
 0x565   : > { %v1980_v59 = vcombine.high %v1954_v55, %v1962_v56  ;;  %v1996_v60 = vcombine.high %v1970_v57, %v1978_v58  ;;  %v1979_v61 = vcombine.low %v1954_v55, %v1962_v56  ;;  %v1995_v62 = vcombine.low %v1970_v57, %v1978_v58 }
 0x567   : > { %v1994_v63 = vrot.slane %v1980_v59, %v3512_v44  ;;  %v2010_v2 = vrot.slane %v1996_v60, %v3512_v44  ;;  %v1987_v3 = vrot.slane %v1979_v61, %v3512_v44  ;;  %v2003_v4 = vrot.slane %v1995_v62, %v3512_v44 }
 0x569   : > { %v2013_v5 = vcombine.low %v1994_v63, %v2010_v2  ;;  %v2012_v6 = vcombine.high %v1987_v3, %v2003_v4  ;;  %v2014_v7 = vcombine.high %v1994_v63, %v2010_v2  ;;  %v2011_v8 = vcombine.low %v1987_v3, %v2003_v4 }
 0x56b   : > { %2020 = vrot.lane.b32.xlu0 %v2013_v5, %s3080_s26  ;;  %2016 = vrot.lane.b32.xlu1 %v2012_v6, %s3081_s8 }
 0x56f   : > { %2024 = vrot.lane.b32.xlu1 %v2014_v7, %s3082_s17 }
 0x5dd   : > { %v2017_v37 = vpop.permute.xlu1 %2016  ;;  %v2021_v9 = vpop.permute.xlu0 %2020 }
 0x5de   : > { %v2027_v10 = vsel %vm1234_vm2, %v2011_v8, %v2017_v37 }
 0x5df   : > { %v2029_v44 = vsel %vm2028_vm3, %v2027_v10, %v2021_v9 }
 0x5e1   : > { %v2025_v11 = vpop.permute.xlu1 %2024 }
 0x5e2   : > { %v2031_v12 = vsel %vm2030_vm4, %v2029_v44, %v2025_v11 }
 0x5e3   : > { %2557 = vmatmul.mubr.msk.f32.vlgmr.msra.gmra.mrb[8].mxu0 %vm568_vm1, %v2031_v12 }
 0x6b6   : > { %v2112_v14 = vpop.f32.mrb[8].mxu0 }
 0x6b7   : > { %v2113_v16 = vadd.f32 %v2427_v13, %v2112_v14  ;;  %v2558_v17 = vpop.f32.mrb[9].mxu0 }
 0x6b9   : > { %v2116_v18 = vsel %vm568_vm1, %v2113_v16, 0.0 }
 0x6ba   : > { %2117 = vadd.xlane.f32.xlu0 %v2116_v18 }
 0x747   : > { %v2118_v19 = vpop.xlane.xlu0 %2117 }
 0x748   : > { %v2120_v20 = vmul.f32 0.03125, %v2118_v19 }
 0x74a   : > { %v2121_v21 = vsub.f32 %v2113_v16, %v2120_v20 }
 0x74c   : > { %v2122_v22 = vmul.f32 %v2121_v21, %v2121_v21 }
 0x74e   : > { %v2123_v23 = vsel %vm568_vm1, %v2122_v22, 0.0 }
 0x74f   : > { %2124 = vadd.xlane.f32.xlu1 %v2123_v23 }
 0x750   : > { %2948 = shalt.err (!%p2945_p11)
}
 0x751   : > { %s2949_s25 = scalar_lea.hbm %s3654_s27, 512  ;;  %s2953_s3 = scalar_lea.hbm %s3825_s11, 1024 }
 0x752   : > { %p2950_p5 = scmp.ne.s32.totalorder %s3654_s27, %s2949_s25  ;;  %p2954_p0 = scmp.lt.u32.totalorder %s3654_s27, %s3825_s11 }
 0x753   : > { %p2955_p4 = scmp.lt.u32.totalorder %s2953_s3, %s2949_s25  ;;  %p2957_p13 = scmp.lt.u32.totalorder %s2949_s25, %s3654_s27 }
 0x754   : > { %p2951_p3 = pnand %p2950_p5, %p3826_p2 }
 0x755   : > { %p2956_p10 = por %p2955_p4, %p2954_p0 }
 0x756   : > { %p2952_p6 = pneg %p2951_p3 }
 0x757   : > { %p2958_p1 = por %p2957_p13, %p2956_p10 }
 0x759   : > { %p2959_p12 = pnand %p2958_p1, %p2952_p6 }
 0x75b   : > { %2962 = shalt.err (!%p2959_p12)
}
 0x75c   : > { %s3084_s30 = smov 128   ;;  %s3827_s13 = sld [smem:[#allocation33_spill]] }
 0x75d   : > { %2606 = dma.vmem_to_hbm [thread:$0]  (%p3826_p2), %s3656_s5, 512, %s3654_s27, %s2154_s24, %s3084_s30, %s3084_s30, %s3081_s8  }
 0x75e   : > { %s3828_s15 = sld [smem:[#allocation34_spill]]  ;;  %s2433_s22 = sshll.u32 %s3053_s20, 7 }
 0x75f   : > { %s553_s23 = scalar_lea.vmem [#allocation14], %s3451_s9  ;;  %s3829_s24 = sld [smem:[#allocation35_spill]] }
 0x760   : > { %s2168_s8 = sshll.u32 %s553_s23, 4  ;;  %s2149_s14 = scalar_lea.sflag [#allocation4], %s3448_s21  ;;  %s3697_s8 = int_to_ptr.vmem [resolvable:$true] %s2168_s8 }
 0x761   : > { %s2963_s10 = scalar_lea.vmem %s3697_s8, 128  ;;  %s3085_s20 = smov [#allocation14]  }
 0x762   : > { %v2429_v28 = vld [vmem:[%s3827_s13] ss:$0 sm:$0xff]  ;;  %p2964_p8 = scmp.ne.s32.totalorder %s3697_s8, %s2963_s10  ;;  %s2967_s9 = sshll.u32 %s3085_s20, 4  ;;  %s2968_s9 = int_to_ptr.vmem [resolvable:$false] %s2967_s9 }
 0x763   : > { %s2969_s3 = scalar_lea.vmem %s2968_s9, 256  ;;  %p2970_p11 = scmp.lt.s32.totalorder %s3697_s8, %s2968_s9 }
 0x764   : > { %v2430_v30 = vld [vmem:[%s3828_s15] ss:$0 sm:$0xff]  ;;  %p2965_p9 = pnand %p2964_p8, %p3826_p2  ;;  %p2971_p5 = scmp.lt.s32.totalorder %s2969_s3, %s2963_s10 }
 0x765   : > { %s3695_s25 = scalar_lea.hbm %s3829_s24, %s2433_s22 }
 0x766   : > { %p2966_p7 = pneg %p2965_p9  ;;  %p2972_p3 = por %p2971_p5, %p2970_p11 }
 0x768   : > { %p2973_p6 = pnand %p2972_p3, %p2966_p7 }
 0x7dc   : > { %v2125_v24 = vpop.xlane.xlu1 %2124 }
 0x7dd   : > { %v2126_v25 = vmul.f32 0.03125, %v2125_v24 }
 0x7df   : > { %v2127_v26 = vadd.f32 1e-06, %v2126_v25 }
 0x7e1   : > { %2731 = vrsqrt.f32 %v2127_v26 }
 0x7eb   : > { %v2732_v27 = vpop.eup %2731 }
 0x7ec   : > { %v2129_v29 = vmul.f32 %v2732_v27, %v2121_v21 }
 0x7ee   : > { %v2137_v31 = vmul.f32 %v2429_v28, %v2129_v29 }
 0x7f0   : > { %v2145_v32 = vadd.f32 %v2430_v30, %v2137_v31 }
 0x7f2   : > { %v2146_v33 = vadd.f32 %v2145_v32, %v3486_v15 }
 0x7f4   : > { %2147 = vst.msk [vmem:[%s553_s23] sm:$0xff] %vm568_vm1, %v2146_v33 }
 0x7f5   : > { %2976 = shalt.err (!%p2973_p6)
}
 0x7f6   : > { %s2977_s21 = scalar_lea.hbm %s3695_s25, 128  ;;  %s2981_s30 = scalar_lea.hbm %s3829_s24, 256 }
 0x7f7   : > { %p2978_p0 = scmp.ne.s32.totalorder %s3695_s25, %s2977_s21  ;;  %p2982_p13 = scmp.lt.u32.totalorder %s3695_s25, %s3829_s24 }
 0x7f8   : > { %p2983_p1 = scmp.lt.u32.totalorder %s2981_s30, %s2977_s21  ;;  %p2985_p8 = scmp.lt.u32.totalorder %s2977_s21, %s3695_s25 }
 0x7f9   : > { %p2979_p4 = pnand %p2978_p0, %p3826_p2 }
 0x7fa   : > { %p2984_p12 = por %p2983_p1, %p2982_p13 }
 0x7fb   : > { %p2980_p10 = pneg %p2979_p4 }
 0x7fc   : > { %p2986_p9 = por %p2985_p8, %p2984_p12 }
 0x7fe   : > { %p2987_p7 = pnand %p2986_p9, %p2980_p10 }
 0x800   : > { %2990 = shalt.err (!%p2987_p7)
}
 0x801   : > { %2605 = dma.vmem_to_hbm [thread:$0]  (%p3826_p2), %s3697_s8, 128, %s3695_s25, %s2149_s14  }
 0x802 PF: > { %s3830_s13 = sld [smem:[#allocation23_spill]]  ;;  %s3831_s1 = sld [smem:[#allocation29_spill]] }
 0x803   : > { %s3832_s12 = sld [smem:[#allocation25_spill]] }
 0x808   : > { %s2197_s15 = sand.u32 1, %s3830_s13   ;;  %p3833_p11 = scmp.ne.s32.totalorder %s3831_s1, 0 }
 0x809   : > { %p3834_p5 = scmp.ge.s32.totalorder %s3832_s12, 2  ;;  %s2198_s22 = scalar_lea.sflag [#allocation4], %s2197_s15 }
 0x80b   : > { %p2633_p3 = pnand %p3834_p5, %p3833_p11 }
 0x80d   : > { %3032 = dma.done.wait (!%p2633_p3), %s2198_s22, 128  }
 0x80e   : > { %3034 = vsyncadd (!%p2633_p3), %s2198_s22, 4294967168  ;;  %s2207_s23 = scalar_lea.sflag [#allocation16], %s2197_s15 }
 0x80f   : > { %3036 = dma.done.wait (!%p2633_p3), %s2207_s23, 512  }
 0x810   : > { %3038 = vsyncadd (!%p2633_p3), %s2207_s23, 4294966784  ;;  %s36_s22 = sadd.s32 1, %s3832_s12   ;;  %s3835_s16 = sld [smem:[#allocation28_spill]] }
 0x811   : > { %p33_p6 = scmp.ge.s32.totalorder %s36_s22, 4   ;;  %s3836_s20 = sld [smem:[#allocation24_spill]] }
 0x812   : > { %s3837_s21 = sld [smem:[#allocation26_spill]]  ;;  %s3838_s17 = smov %s3045_s18 }
 0x813   : > { %s3839_s18 = smov %s3049_s19  ;;  %35 = sbr.rel (!%p33_p6) target bundleno = 20 (0x14), region = 162 }
 0x816   : > { %s3840_s19 = smov %s3835_s16 }
 0x81a   :  { %2212 = vsyncpa [#allocation3], 1 }
 0x81b   :  { %2214 = vsyncpa [#allocation3 + $0x1], 1 }
 0x81c   :  { %2215 = vsyncpa [#allocation6], 1 }
 0x81d   :  { %2217 = vsyncpa [#allocation6 + $0x1], 1 }
 0x81e   :  { %2218 = vsyncpa [#allocation9], 1 }
 0x81f   :  { %2219 = vsyncpa [#allocation12], 1 }
 0x820   :  { %2220 = vsyncpa [#allocation4], 1 }
 0x821   :  { %2222 = vsyncpa [#allocation4 + $0x1], 1 }
 0x822   :  { %2223 = vsyncpa [#allocation16], 1 }
 0x823   :  { %2225 = vsyncpa [#allocation16 + $0x1], 1 }

</bundles_post_ra>
